<compile_context>
chip_gen: v7x
topology: tpu7x:2x2x1
jax: 0.10.0
libtpu: 0.0.40
codegen_flags: <defaults>
</compile_context>

<pallas_src>
import math

import numpy as np
import jax
import jax.numpy as jnp
from jax.experimental import pallas as pl
from jax.experimental.pallas import tpu as pltpu

ROI_H = 28       # ROIRotate.height
ROI_W = 28       # ROIRotate.width (kept for parity; unused by forward math)
OUT_SIZE = 224   # F.interpolate target size


# ----------------------------------------------------------------------------
# Host-side glue: replicate the cv2 / numpy scalar math of the reference.
# ----------------------------------------------------------------------------
def _affine_from_3pts(src_pts, dst_pts):
    # Same 3-point linear system cv2.getAffineTransform solves.
    src = np.asarray(src_pts, np.float64)
    dst = np.asarray(dst_pts, np.float64)
    m = np.hstack([src, np.ones((3, 1))])
    row_x = np.linalg.solve(m, dst[:, 0])
    row_y = np.linalg.solve(m, dst[:, 1])
    return np.stack([row_x, row_y])  # (2, 3)


def _param2theta(param, w, h):
    # Verbatim port of ROIRotate.param2theta.
    param = np.vstack([param, [0.0, 0.0, 1.0]])
    param = np.linalg.inv(param)
    theta = np.zeros([2, 3])
    theta[0, 0] = param[0, 0]
    theta[0, 1] = param[0, 1] * h / w
    theta[0, 2] = param[0, 2] * 2 / w + theta[0, 0] + theta[0, 1] - 1
    theta[1, 0] = param[1, 0] * w / h
    theta[1, 1] = param[1, 1]
    theta[1, 2] = param[1, 2] * 2 / h + theta[1, 0] + theta[1, 1] - 1
    return theta


def _resize_coords(n_out, n_in):
    # F.interpolate(..., mode='bilinear', align_corners=True) source coords.
    if n_in == 1:
        return np.zeros((n_out,), dtype=np.float64)
    return np.arange(n_out, dtype=np.float64) * (n_in - 1) / (n_out - 1)


def _tent_2d(coords, n_in):
    # Bilinear (tent) weights of sample positions `coords` (input index space)
    # against input indices 0..n_in-1.  Out-of-range samples get zero weight,
    # which is exactly grid_sample's padding_mode='zeros' behavior.
    r = np.arange(n_in, dtype=np.float64)[None, :]
    c = np.asarray(coords, np.float64)[:, None]
    return np.maximum(0.0, 1.0 - np.abs(c - r))


# Uy depends only on constants -> precompute once (F.interpolate rows operator).
_UY = _tent_2d(_resize_coords(OUT_SIZE, ROI_H), ROI_H)   # (224, 28)


def _pick_c_tile(C, cap=32):
    # Largest divisor of C that is <= cap.  Keeps the double-buffered output
    # block comfortably inside VMEM on v5e/v6e/v7x while still amortizing the
    # per-grid-step overhead over many channels.
    best = 1
    for d in range(1, min(C, cap) + 1):
        if C % d == 0:
            best = d
    return best


# ----------------------------------------------------------------------------
# Pallas kernel: per box, per channel-tile do  A_y @ F[c] @ A_x^T on the MXU.
# ----------------------------------------------------------------------------
def _roi_sample_resize(feature_chw, a_y, a_xt):
    """feature_chw: (C, H, W) bf16; a_y: (N, 224, H) bf16; a_xt: (N, W, 224) bf16."""
    C, H, W = feature_chw.shape
    N = a_y.shape[0]
    c_tile = _pick_c_tile(C)
    n_ct = C // c_tile
    # Re-associate at trace time: contract the larger spatial axis first.
    contract_w_first = H < W

    def kernel(ay_ref, f_ref, axt_ref, o_ref):
        ay = ay_ref[0]       # (224, H)  bf16
        axt = axt_ref[0]     # (W, 224)  bf16
        # Static unroll over the channel tile: plain 2-D MXU matmuls, no
        # transposes / relayouts, output written per channel.
        for c in range(c_tile):
            f = f_ref[c]     # (H, W) bf16
            if contract_w_first:
                tmp = jnp.dot(f, axt, preferred_element_type=jnp.float32)    # (H, 224)
                o_ref[0, c] = jnp.dot(ay, tmp, preferred_element_type=jnp.float32)
            else:
                tmp = jnp.dot(ay, f, preferred_element_type=jnp.float32)     # (224, W)
                o_ref[0, c] = jnp.dot(tmp, axt, preferred_element_type=jnp.float32)

    if contract_w_first:
        flops = 2.0 * N * C * (H * W * OUT_SIZE + H * OUT_SIZE * OUT_SIZE)
    else:
        flops = 2.0 * N * C * (OUT_SIZE * H * W + OUT_SIZE * W * OUT_SIZE)
    bytes_accessed = (
        N * C * OUT_SIZE * OUT_SIZE * 4          # f32 output writeback (dominant)
        + N * C * H * W * 2                      # bf16 feature re-read per box
        + N * (OUT_SIZE * H + W * OUT_SIZE) * 2  # bf16 A_y / A_xt per box
    )

    return pl.pallas_call(
        kernel,
        out_shape=jax.ShapeDtypeStruct((N, C, OUT_SIZE, OUT_SIZE), jnp.float32),
        grid=(N, n_ct),
        in_specs=[
            # A_y / A_xt: one block per box, resident across the channel tiles
            # (index_map ignores the inner ct axis).
            pl.BlockSpec((1, OUT_SIZE, H), lambda i, ct: (i, 0, 0)),
            # feature: one channel tile per inner step.
            pl.BlockSpec((c_tile, H, W), lambda i, ct: (ct, 0, 0)),
            pl.BlockSpec((1, W, OUT_SIZE), lambda i, ct: (i, 0, 0)),
        ],
        out_specs=pl.BlockSpec((1, c_tile, OUT_SIZE, OUT_SIZE),
                               lambda i, ct: (i, ct, 0, 0)),
        compiler_params=pltpu.CompilerParams(
            dimension_semantics=("parallel", "parallel")),
        cost_estimate=pl.CostEstimate(flops=int(flops),
                                      transcendentals=0,
                                      bytes_accessed=int(bytes_accessed)),
    )(a_y, feature_chw, a_xt)


# ----------------------------------------------------------------------------
# Forward pass
# ----------------------------------------------------------------------------
def roi_rotate(feature, boxes, num_boxes):
    """JAX/Pallas port of ROIRotate.forward.

    feature: (1, C, H, W) float32 (NCHW, batch must be 1 as implied by .repeat)
    boxes:   (num_boxes, 1, 4) float32, each box = (x1, y1, x3, y3)
    Returns: (num_boxes, C, 224, 224) float32, in width-descending box order
             (same ordering as the reference's recog_input).
    """
    _, C, H, W = feature.shape
    boxes_np = np.asarray(boxes, dtype=np.float32)

    thetas = []
    widths = []
    maximum_width = 0
    for b in range(num_boxes):
        x1, y1, x3, y3 = [float(v) for v in boxes_np[b, 0]]
        x2, y2 = x3, y1
        x4, y4 = x1, y3
        # cv2.minAreaRect on this axis-aligned rectangle -> side lengths; the
        # reference then swaps so box_w >= box_h.
        box_w, box_h = abs(x3 - x1), abs(y3 - y1)
        if box_w <= box_h:
            box_w, box_h = box_h, box_w
        width_box = math.ceil(ROI_H * box_w / box_h)
        width_box = min(width_box, W)
        if width_box > maximum_width:
            maximum_width = width_box
        src_pts = np.float32([(x1, y1), (x2, y2), (x4, y4)])
        dst_pts = np.float32([(0, 0), (width_box, 0), (0, ROI_H)])
        affine = _affine_from_3pts(src_pts, dst_pts)
        theta = _param2theta(affine, W, H)
        # mimic: *= 1e10 ; torch.tensor(..., float32) ; /= 1e10
        theta = (theta * 1e10).astype(np.float32) / np.float32(1e10)
        thetas.append(theta.astype(np.float64))
        widths.append(width_box)

    # Sort by width, descending (same tie-break as np.argsort(...)[::-1]).
    lengths = np.array(widths)
    indices = np.argsort(lengths)[::-1].copy()
    lengths = lengths[indices]
    thetas_arr = np.stack([thetas[i] for i in indices])      # (N, 2, 3)

    # Boxes are axis-aligned -> theta has no rotation terms, so grid_sample is
    # separable into row/column resampling matrices.
    assert np.max(np.abs(thetas_arr[:, 0, 1])) < 1e-9
    assert np.max(np.abs(thetas_arr[:, 1, 0])) < 1e-9

    # Bilinear resize operators (F.interpolate, align_corners=True).
    Uy = _UY                                                              # (224, 28)
    Ux = _tent_2d(_resize_coords(OUT_SIZE, maximum_width), maximum_width)  # (224, maxW)

    # --- vectorized per-box resampling matrices -------------------------------
    # Rows 0..27 of the full H x W affine grid (the crop keeps [0:28]).
    i = np.arange(ROI_H, dtype=np.float64)
    y_base = -1.0 + 2.0 * i / (H - 1)                                     # (28,)
    gy = thetas_arr[:, 1, 1:2] * y_base[None, :] + thetas_arr[:, 1, 2:3]  # (N, 28)
    iy = (gy + 1.0) / 2.0 * (H - 1)
    Ry = np.maximum(0.0, 1.0 - np.abs(iy[:, :, None]
                                      - np.arange(H, dtype=np.float64)[None, None, :]))  # (N,28,H)

    # Columns 0..w_box-1 of the grid; the rest are the zero-pad columns.
    j = np.arange(maximum_width, dtype=np.float64)
    x_base = -1.0 + 2.0 * j / (W - 1)
    gx = thetas_arr[:, 0, 0:1] * x_base[None, :] + thetas_arr[:, 0, 2:3]  # (N, maxW)
    ix = (gx + 1.0) / 2.0 * (W - 1)
    Rx = np.maximum(0.0, 1.0 - np.abs(ix[:, :, None]
                                      - np.arange(W, dtype=np.float64)[None, None, :]))  # (N,maxW,W)
    Rx *= (np.arange(maximum_width)[None, :, None]
           < lengths[:, None, None]).astype(np.float64)        # zero padding columns

    a_y = np.einsum('ph,bhn->bpn', Uy, Ry)                    # (N, 224, H)
    a_xt = np.einsum('pm,bmw->bpw', Ux, Rx).transpose(0, 2, 1)  # (N, W, 224)

    # bf16 operands on the MXU (f32 accumulation inside the kernel); the output
    # stays f32 to match the reference dtype.
    a_y_dev = jnp.asarray(a_y.astype(np.float32)).astype(jnp.bfloat16)
    a_xt_dev = jnp.asarray(np.ascontiguousarray(a_xt).astype(np.float32)).astype(jnp.bfloat16)
    feature_chw = jnp.asarray(feature, dtype=jnp.float32)[0].astype(jnp.bfloat16)  # (C, H, W)

    out = _roi_sample_resize(feature_chw, a_y_dev, a_xt_dev)
    # TODO(synk): the reference's final `.to('cuda')` is a device move with no
    # Pallas equivalent; the result stays on the default JAX (TPU) device.
    return out


if __name__ == "__main__":
    key = jax.random.PRNGKey(0)
    C, H, W = 4, 32, 64
    feature = jax.random.normal(key, (1, C, H, W), dtype=jnp.float32)  # NCHW
    boxes = jnp.asarray(
        [[[4.0, 5.0, 40.0, 20.0]],
         [[10.0, 2.0, 30.0, 30.0]],
         [[2.0, 8.0, 60.0, 18.0]]], dtype=jnp.float32)                 # (3, 1, 4)
    num_boxes = 3

    out = roi_rotate(feature, boxes, num_boxes)
    out = jax.block_until_ready(out)
    assert out.shape == (num_boxes, C, 224, 224)
    assert out.dtype == jnp.float32
    assert bool(jnp.isfinite(out).all())
    print("KERNEL_OK")
</pallas_src>

<mosaic_0001>
module attributes {stable_mosaic.version = 11 : i64} {
  func.func @kernel(%arg0: i32, %arg1: i32, %arg2: memref<1x224x32xbf16, #tpu.memory_space<vmem>>, %arg3: memref<4x32x64xbf16, #tpu.memory_space<vmem>>, %arg4: memref<1x64x224xbf16, #tpu.memory_space<vmem>>, %arg5: memref<1x4x224x224xf32, #tpu.memory_space<vmem>>) attributes {dimension_semantics = [#tpu.dimension_semantics<parallel>, #tpu.dimension_semantics<parallel>], iteration_bounds = array<i64: 3, 1>, scalar_prefetch = 0 : i64, scratch_operands = 0 : i64, tpu.core_type = #tpu.core_type<tc>, window_params = [{transform_indices = @transform_0, window_bounds = array<i64: 1, 224, 32>}, {transform_indices = @transform_1, window_bounds = array<i64: 4, 32, 64>}, {transform_indices = @transform_2, window_bounds = array<i64: 1, 64, 224>}, {transform_indices = @transform_3, window_bounds = array<i64: 1, 4, 224, 224>}]} {
    %c0 = arith.constant 0 : index
    %c0_0 = arith.constant 0 : index
    %c0_1 = arith.constant 0 : index
    %0 = vector.load %arg2[%c0, %c0_0, %c0_1] : memref<1x224x32xbf16, #tpu.memory_space<vmem>>, vector<1x224x32xbf16>
    %1 = vector.shape_cast %0 : vector<1x224x32xbf16> to vector<224x32xbf16>
    %c0_2 = arith.constant 0 : index
    %c0_3 = arith.constant 0 : index
    %c0_4 = arith.constant 0 : index
    %2 = vector.load %arg4[%c0_2, %c0_3, %c0_4] : memref<1x64x224xbf16, #tpu.memory_space<vmem>>, vector<1x64x224xbf16>
    %3 = vector.shape_cast %2 : vector<1x64x224xbf16> to vector<64x224xbf16>
    %c0_5 = arith.constant 0 : index
    %c0_6 = arith.constant 0 : index
    %c0_7 = arith.constant 0 : index
    %4 = vector.load %arg3[%c0_5, %c0_6, %c0_7] : memref<4x32x64xbf16, #tpu.memory_space<vmem>>, vector<1x32x64xbf16>
    %5 = vector.shape_cast %4 : vector<1x32x64xbf16> to vector<32x64xbf16>
    %cst = arith.constant dense<0.000000e+00> : vector<32x224xf32>
    %6 = tpu.matmul %5, %3, %cst {dimension_numbers = #tpu.dot_dimension_numbers<[1], [0], [0], [1], [0, 0, 1, 1], [], []>} : vector<32x64xbf16>, vector<64x224xbf16>, vector<32x224xf32> -> vector<32x224xf32>
    %cst_8 = arith.constant dense<0.000000e+00> : vector<224x224xf32>
    %7 = tpu.matmul %1, %6, %cst_8 {dimension_numbers = #tpu.dot_dimension_numbers<[1], [0], [0], [1], [0, 0, 1, 1], [], []>} : vector<224x32xbf16>, vector<32x224xf32>, vector<224x224xf32> -> vector<224x224xf32>
    %c0_9 = arith.constant 0 : index
    %c0_10 = arith.constant 0 : index
    %c0_11 = arith.constant 0 : index
    %c0_12 = arith.constant 0 : index
    %8 = vector.load %arg5[%c0_9, %c0_10, %c0_11, %c0_12] : memref<1x4x224x224xf32, #tpu.memory_space<vmem>>, vector<1x1x224x224xf32>
    %9 = vector.shape_cast %8 : vector<1x1x224x224xf32> to vector<224x224xf32>
    %10 = vector.shape_cast %7 : vector<224x224xf32> to vector<1x1x224x224xf32>
    tpu.vector_store %arg5[%c0_9, %c0_10, %c0_11, %c0_12], %10 {strides = array<i32>} : memref<1x4x224x224xf32, #tpu.memory_space<vmem>>, vector<1x1x224x224xf32>,
    %c1 = arith.constant 1 : index
    %c0_13 = arith.constant 0 : index
    %c0_14 = arith.constant 0 : index
    %11 = vector.load %arg3[%c1, %c0_13, %c0_14] : memref<4x32x64xbf16, #tpu.memory_space<vmem>>, vector<1x32x64xbf16>
    %12 = vector.shape_cast %11 : vector<1x32x64xbf16> to vector<32x64xbf16>
    %cst_15 = arith.constant dense<0.000000e+00> : vector<32x224xf32>
    %13 = tpu.matmul %12, %3, %cst_15 {dimension_numbers = #tpu.dot_dimension_numbers<[1], [0], [0], [1], [0, 0, 1, 1], [], []>} : vector<32x64xbf16>, vector<64x224xbf16>, vector<32x224xf32> -> vector<32x224xf32>
    %cst_16 = arith.constant dense<0.000000e+00> : vector<224x224xf32>
    %14 = tpu.matmul %1, %13, %cst_16 {dimension_numbers = #tpu.dot_dimension_numbers<[1], [0], [0], [1], [0, 0, 1, 1], [], []>} : vector<224x32xbf16>, vector<32x224xf32>, vector<224x224xf32> -> vector<224x224xf32>
    %c0_17 = arith.constant 0 : index
    %c1_18 = arith.constant 1 : index
    %c0_19 = arith.constant 0 : index
    %c0_20 = arith.constant 0 : index
    %15 = vector.load %arg5[%c0_17, %c1_18, %c0_19, %c0_20] : memref<1x4x224x224xf32, #tpu.memory_space<vmem>>, vector<1x1x224x224xf32>
    %16 = vector.shape_cast %15 : vector<1x1x224x224xf32> to vector<224x224xf32>
    %17 = vector.shape_cast %14 : vector<224x224xf32> to vector<1x1x224x224xf32>
    tpu.vector_store %arg5[%c0_17, %c1_18, %c0_19, %c0_20], %17 {strides = array<i32>} : memref<1x4x224x224xf32, #tpu.memory_space<vmem>>, vector<1x1x224x224xf32>,
    %c2 = arith.constant 2 : index
    %c0_21 = arith.constant 0 : index
    %c0_22 = arith.constant 0 : index
    %18 = vector.load %arg3[%c2, %c0_21, %c0_22] : memref<4x32x64xbf16, #tpu.memory_space<vmem>>, vector<1x32x64xbf16>
    %19 = vector.shape_cast %18 : vector<1x32x64xbf16> to vector<32x64xbf16>
    %cst_23 = arith.constant dense<0.000000e+00> : vector<32x224xf32>
    %20 = tpu.matmul %19, %3, %cst_23 {dimension_numbers = #tpu.dot_dimension_numbers<[1], [0], [0], [1], [0, 0, 1, 1], [], []>} : vector<32x64xbf16>, vector<64x224xbf16>, vector<32x224xf32> -> vector<32x224xf32>
    %cst_24 = arith.constant dense<0.000000e+00> : vector<224x224xf32>
    %21 = tpu.matmul %1, %20, %cst_24 {dimension_numbers = #tpu.dot_dimension_numbers<[1], [0], [0], [1], [0, 0, 1, 1], [], []>} : vector<224x32xbf16>, vector<32x224xf32>, vector<224x224xf32> -> vector<224x224xf32>
    %c0_25 = arith.constant 0 : index
    %c2_26 = arith.constant 2 : index
    %c0_27 = arith.constant 0 : index
    %c0_28 = arith.constant 0 : index
    %22 = vector.load %arg5[%c0_25, %c2_26, %c0_27, %c0_28] : memref<1x4x224x224xf32, #tpu.memory_space<vmem>>, vector<1x1x224x224xf32>
    %23 = vector.shape_cast %22 : vector<1x1x224x224xf32> to vector<224x224xf32>
    %24 = vector.shape_cast %21 : vector<224x224xf32> to vector<1x1x224x224xf32>
    tpu.vector_store %arg5[%c0_25, %c2_26, %c0_27, %c0_28], %24 {strides = array<i32>} : memref<1x4x224x224xf32, #tpu.memory_space<vmem>>, vector<1x1x224x224xf32>,
    %c3 = arith.constant 3 : index
    %c0_29 = arith.constant 0 : index
    %c0_30 = arith.constant 0 : index
    %25 = vector.load %arg3[%c3, %c0_29, %c0_30] : memref<4x32x64xbf16, #tpu.memory_space<vmem>>, vector<1x32x64xbf16>
    %26 = vector.shape_cast %25 : vector<1x32x64xbf16> to vector<32x64xbf16>
    %cst_31 = arith.constant dense<0.000000e+00> : vector<32x224xf32>
    %27 = tpu.matmul %26, %3, %cst_31 {dimension_numbers = #tpu.dot_dimension_numbers<[1], [0], [0], [1], [0, 0, 1, 1], [], []>} : vector<32x64xbf16>, vector<64x224xbf16>, vector<32x224xf32> -> vector<32x224xf32>
    %cst_32 = arith.constant dense<0.000000e+00> : vector<224x224xf32>
    %28 = tpu.matmul %1, %27, %cst_32 {dimension_numbers = #tpu.dot_dimension_numbers<[1], [0], [0], [1], [0, 0, 1, 1], [], []>} : vector<224x32xbf16>, vector<32x224xf32>, vector<224x224xf32> -> vector<224x224xf32>
    %c0_33 = arith.constant 0 : index
    %c3_34 = arith.constant 3 : index
    %c0_35 = arith.constant 0 : index
    %c0_36 = arith.constant 0 : index
    %29 = vector.load %arg5[%c0_33, %c3_34, %c0_35, %c0_36] : memref<1x4x224x224xf32, #tpu.memory_space<vmem>>, vector<1x1x224x224xf32>
    %30 = vector.shape_cast %29 : vector<1x1x224x224xf32> to vector<224x224xf32>
    %31 = vector.shape_cast %28 : vector<224x224xf32> to vector<1x1x224x224xf32>
    tpu.vector_store %arg5[%c0_33, %c3_34, %c0_35, %c0_36], %31 {strides = array<i32>} : memref<1x4x224x224xf32, #tpu.memory_space<vmem>>, vector<1x1x224x224xf32>,
    return
  }
  func.func @transform_0(%arg0: i32, %arg1: i32) -> (i32, i32, i32) {
    %c0_i32 = arith.constant 0 : i32
    %c0_i32_0 = arith.constant 0 : i32
    %c0_i32_1 = arith.constant 0 : i32
    return %arg0, %c0_i32, %c0_i32_0 : i32, i32, i32
  }
  func.func @transform_1(%arg0: i32, %arg1: i32) -> (i32, i32, i32) {
    %c0_i32 = arith.constant 0 : i32
    %c0_i32_0 = arith.constant 0 : i32
    %c0_i32_1 = arith.constant 0 : i32
    return %arg1, %c0_i32, %c0_i32_0 : i32, i32, i32
  }
  func.func @transform_2(%arg0: i32, %arg1: i32) -> (i32, i32, i32) {
    %c0_i32 = arith.constant 0 : i32
    %c0_i32_0 = arith.constant 0 : i32
    %c0_i32_1 = arith.constant 0 : i32
    return %arg0, %c0_i32, %c0_i32_0 : i32, i32, i32
  }
  func.func @transform_3(%arg0: i32, %arg1: i32) -> (i32, i32, i32, i32) {
    %c0_i32 = arith.constant 0 : i32
    %c0_i32_0 = arith.constant 0 : i32
    %c0_i32_1 = arith.constant 0 : i32
    return %arg0, %arg1, %c0_i32, %c0_i32_0 : i32, i32, i32, i32
  }
}

</mosaic_0001>

<bundles_post_ra>
// kernel: tpu_custom_call.1
= control target key start
LH: loop header
LB: loop body
LE: loop exit
PB: predicated region body
PF: predicated region fallthrough
CT: control target
= control target key end

     0   :  { %8 = vsyncpa [#allocation3], 0  ;;  %s3351_s0 = inlined_call_operand.vmem [shape: bf16[3,224,32], index: 0, kind: input, shape index: {}]   ;;  %s3352_s1 = inlined_call_operand.hbm [shape: bf16[4,32,64], index: 1, kind: input, shape index: {}]   ;;  %s3353_s2 = inlined_call_operand.hbm [shape: bf16[3,64,224], index: 2, kind: input, shape index: {}]   ;;  %s3354_s3 = inlined_call_operand.hbm [shape: f32[3,4,224,224], index: 3, kind: output, shape index: {}]  }
   0x1   :  { %9 = vsyncpa [#allocation6], 0 }
   0x2   :  { %11 = vsyncpa [#allocation6 + $0x1], 0 }
   0x3   :  { %12 = vsyncpa [#allocation4], 0 }
   0x4   :  { %14 = vsyncpa [#allocation4 + $0x1], 0  ;;  %s2513_s12 = smov 0   ;;  %s2515_s13 = smov 0  }
   0x5   :  { %s2517_s14 = smov 0   ;;  %s2519_s15 = smov 0  }
   0x6   :  { %s2521_s16 = smov 0   ;;  %s2523_s17 = smov 0  }
   0x7 LB: > { %s1910_s18 = sadd.s32 4294967295, %s2481_s17   ;;  %s1911_s19 = sadd.s32 4294967294, %s2481_s17   ;;  %s2481_s17 = sphi %s2523_s17, %s20_s17   ;;  %s2477_s16 = sphi %s2521_s16, %s3377_s16   ;;  %s2473_s15 = sphi %s2519_s15, %s3376_s15   ;;  %s2469_s14 = sphi %s2517_s14, %s3375_s14   ;;  %s2465_s13 = sphi %s2515_s13, %s3374_s13   ;;  %s2461_s12 = sphi %s2513_s12, %s3373_s12  }
   0x8   : > { %p104_p0 = scmp.ne.s32.totalorder %s2465_s13, %s2461_s12  ;;  %p2547_p1 = scmp.eq.s32.totalorder %s1910_s18, 0 }
   0x9   : > { %p2551_p2 = scmp.eq.s32.totalorder %s1910_s18, 2  ;;  %p136_p3 = scmp.eq.s32.totalorder %s1911_s19, 2 }
   0xa   : > { %s3359_s20 = scalar_select %p2547_p1, 1, 0 }
   0xb   : > { %s3360_s21 = scalar_select %p2551_p2, 1, 0 }
   0xc   : > { %p2557_p4 = por %p2547_p1, %p104_p0  ;;  %p1912_p5 = scmp.ge.s32.totalorder %s2481_s17, 1 }
   0xd   : > { %p2562_p6 = por %p136_p3, %p104_p0  ;;  %p143_p7 = scmp.lt.s32.totalorder %s2481_s17, 4 }
   0xe   : > { %s3361_s22 = scalar_select %p2557_p4, 1, 0 }
   0xf   : > { %s3362_s23 = scalar_select %p2562_p6, 1, 0 }
  0x10   : > { %p2567_p8 = pnand %p1912_p5, %p143_p7  ;;  %s2483_s25 = smov [#allocation2]  }
  0x11   : > { %s159_s26 = sshll.u32 %s2483_s25, 4  ;;  %s32_s28 = sadd.s32 1, %s2477_s16  ;;  %s160_s26 = int_to_ptr.vmem [resolvable:$true] %s159_s26 }
  0x12   : > { %s3363_s24 = scalar_select %p2567_p8, 1, 0 }
  0x13   : > { %p2231_p9 = pneg %p2567_p8  ;;  %s2337_s4 = scalar_lea.hbm %s3352_s1, 1024 }
  0x14   : > { %p2338_p11 = scmp.ne.s32.totalorder %s3352_s1, %s2337_s4  ;;  %p2344_p3 = scmp.lt.u32.totalorder %s2337_s4, %s3352_s1 }
  0x15   : > { %p2575_p10 = pnand %p2231_p9, %p2547_p1 }
  0x17   : > { %p2339_p12 = pneg %p2575_p10 }
  0x19   : > { %p2340_p13 = pnand %p2339_p12, %p2338_p11 }
  0x1b   : > { %p2341_p0 = pneg %p2340_p13 }
  0x1d   : > { %p2346_p5 = pnand %p2344_p3, %p2341_p0 }
  0x1f   : > { %2349 = shalt.err (!%p2346_p5)
}
  0x20   : > { %s2350_s9 = scalar_lea.vmem %s160_s26, 1024  ;;  %p2358_p4 = scmp.lt.s32.totalorder %s160_s26, %s160_s26 }
  0x21   : > { %p2351_p7 = scmp.ne.s32.totalorder %s160_s26, %s2350_s9  ;;  %p2359_p1 = scmp.lt.s32.totalorder %s2350_s9, %s2350_s9 }
  0x23   : > { %p2353_p9 = pnand %p2351_p7, %p2339_p12  ;;  %p2360_p8 = por %p2359_p1, %p2358_p4 }
  0x25   : > { %p2354_p6 = pneg %p2353_p9 }
  0x27   : > { %p2361_p2 = pnand %p2360_p8, %p2354_p6 }
  0x29   : > { %2364 = shalt.err (!%p2361_p2)
}
  0x2a   : > { %s2484_s10 = smov 64   ;;  %s2485_s11 = smov 4  }
  0x2b   : > { %2234 = dma.hbm_to_vmem [thread:$0]  (!%p2575_p10), %s3352_s1, 1024, %s160_s26, [#allocation3], %s2484_s10, %s2484_s10, %s2485_s11  }
  0x2c   : > { %p34_p1 = scmp.ge.s32.totalorder %s32_s28, 3  ;;  %s91_s25 = sadd.s32 1, %s2469_s14 }
  0x2d   : > { %p98_p2 = scmp.ne.s32.totalorder %s2469_s14, %s2465_s13  ;;  %p99_p4 = scmp.eq.s32.totalorder %s2481_s17, 0 }
  0x2e   : > { %s3379_s28 = smov (%p34_p1, %s32_s28), 0  ;;  %p3366_p8 = scmp.ne.s32.totalorder %s3360_s21, 0 }
  0x2f   : > { %p2602_p6 = por %p99_p4, %p98_p2  ;;  %s88_s27 = ssub.s32 %s2477_s16, %s3379_s28 }
  0x30   : > { %p2608_p11 = por %p3366_p8, %p98_p2  ;;  %p2244_p12 = scmp.lt.s32.totalorder %s2481_s17, 3 }
  0x31   : > { %p89_p10 = scmp.eq.s32.totalorder %s88_s27, 0  ;;  %s181_s26 = sand.u32 1, %s2469_s14  }
  0x32   : > { %s1915_s4 = sshll.u32 %s181_s26, 6  ;;  %s2187_s6 = sshll.u32 %s2477_s16, 10 }
  0x33   : > { %s2617_s5 = scalar_select %p89_p10, %s2469_s14, %s91_s25  }
  0x34   : > { %s2623_s9 = scalar_lea.hbm %s3353_s2, %s2187_s6  ;;  %s185_s21 = scalar_lea.vmem [#allocation5], %s1915_s4 }
  0x35   : > { %s192_s10 = sshll.u32 %s185_s21, 4  ;;  %p2629_p13 = pnand %p2244_p12, %p2602_p6  ;;  %s2625_s10 = int_to_ptr.vmem [resolvable:$true] %s192_s10 }
  0x36   : > { %s2633_s18 = scalar_lea.sflag [#allocation6], %s181_s26  ;;  %s2365_s19 = scalar_lea.hbm %s2623_s9, 1024 }
  0x37   : > { %p2366_p0 = scmp.ne.s32.totalorder %s2623_s9, %s2365_s19  ;;  %p2367_p3 = pneg %p2629_p13 }
  0x38   : > { %s2370_s29 = scalar_lea.hbm %s3353_s2, 3072  ;;  %p2371_p9 = scmp.lt.u32.totalorder %s2623_s9, %s3353_s2 }
  0x39   : > { %p2368_p5 = pnand %p2367_p3, %p2366_p0  ;;  %p2372_p1 = scmp.lt.u32.totalorder %s2370_s29, %s2365_s19 }
  0x3a   : > { %p2374_p4 = scmp.lt.u32.totalorder %s2365_s19, %s2623_s9 }
  0x3b   : > { %p2369_p7 = pneg %p2368_p5  ;;  %p2373_p2 = por %p2372_p1, %p2371_p9 }
  0x3d   : > { %p2375_p6 = por %p2374_p4, %p2373_p2 }
  0x3f   : > { %p2376_p8 = pnand %p2375_p6, %p2369_p7 }
  0x41   : > { %2379 = shalt.err (!%p2376_p8)
}
  0x42   : > { %s2380_s26 = scalar_lea.vmem %s2625_s10, 1024  ;;  %s2486_s7 = smov [#allocation5]  }
  0x43   : > { %p2381_p12 = scmp.ne.s32.totalorder %s2625_s10, %s2380_s26  ;;  %s2385_s8 = sshll.u32 %s2486_s7, 4  ;;  %s2386_s8 = int_to_ptr.vmem [resolvable:$false] %s2385_s8 }
  0x44   : > { %s2387_s21 = scalar_lea.vmem %s2386_s8, 2048  ;;  %p2388_p5 = scmp.lt.s32.totalorder %s2625_s10, %s2386_s8 }
  0x45   : > { %p2383_p10 = pnand %p2381_p12, %p2367_p3  ;;  %p2389_p9 = scmp.lt.s32.totalorder %s2387_s21, %s2380_s26 }
  0x47   : > { %p2384_p0 = pneg %p2383_p10  ;;  %p2390_p1 = por %p2389_p9, %p2388_p5 }
  0x49   : > { %p2391_p2 = pnand %p2390_p1, %p2384_p0 }
  0x4b   : > { %2394 = shalt.err (!%p2391_p2)
}
  0x4c   : > { %s2487_s19 = smov 128   ;;  %s2488_s25 = smov 8  }
  0x4d   : > { %2238 = dma.hbm_to_vmem [thread:$0]  (!%p2629_p13), %s2623_s9, 1024, %s2625_s10, %s2633_s18, %s2487_s19, %s2487_s19, %s2488_s25  }
  0x4e   : > { %p3369_p3 = scmp.ne.s32.totalorder %s3363_s24, 0 }
  0x4f   : > { %p3370_p7 = scmp.ne.s32.totalorder (!%p3369_p3), %s3359_s20, 0 }
  0x50   : > { %204 = sbr.rel (%p3369_p3) target bundleno = 1014 (0x3f6), region = 32 }
  0x57   : > { %2448 = dma.done.wait (%p3370_p7), [#allocation3], 1024  }
  0x58   : > { %2450 = vsyncadd (%p3370_p7), [#allocation3], 4294966272  ;;  %s2668_s27 = sand.u32 1, %s2465_s13   ;;  %p3371_p4 = scmp.ne.s32.totalorder %s3361_s22, 0 }
  0x59   : > { %s1920_s29 = sshll.u32 %s2668_s27, 6  ;;  %s211_s4 = scalar_lea.sflag [#allocation6], %s2668_s27 }
  0x5a   : > { %s214_s6 = scalar_lea.vmem [#allocation5], %s1920_s29 }
  0x5b   : > { %2452 = dma.done.wait (%p3371_p4), %s211_s4, 1024  }
  0x5c   : > { %2454 = vsyncadd (%p3371_p4), %s211_s4, 4294966272  ;;  %v2489_v0 = vmov 0   ;;  %v2678_v1 = vld [vmem:[%s214_s6 + $0x4] ss:$8 sps:$4 sm:$0xff]   ;;  %v2680_v2 = vld [vmem:[%s214_s6] ss:$8 sps:$4 sm:$0xff]  }
  0x5d   : > { %379 = vmatprep.mubr.bf16.mxu1 %v2489_v0  ;;  %828 = vmatprep.mubr.bf16.mxu0 %v2489_v0  ;;  %v2684_v3 = vld [vmem:[%s214_s6 + $0x14] ss:$8 sps:$4 sm:$0xff]   ;;  %v2688_v4 = vld [vmem:[%s214_s6 + $0x10] ss:$8 sps:$4 sm:$0xff]   ;;  %v2692_v5 = vld [vmem:[%s214_s6 + $0x24] ss:$8 sps:$4 sm:$0xff]  }
  0x5e   : > { %347 = vmatprep.subr.bf16.mxu1 %v2678_v1  ;;  %796 = vmatprep.subr.bf16.mxu0 %v2678_v1  ;;  %v2696_v6 = vld [vmem:[%s214_s6 + $0x20] ss:$8 sps:$4 sm:$0xff]   ;;  %v2700_v7 = vld [vmem:[%s214_s6 + $0x34] ss:$8 sps:$4 sm:$0xff]   ;;  %v2702_v8 = vld [vmem:[%s214_s6 + $0x30] ss:$8 sps:$4 sm:$0xff]  }
  0x5f   : > { %348 = vmatpush1.bf16.msra.mxu1 %v2680_v2  ;;  %797 = vmatpush1.bf16.msra.mxu0 %v2680_v2  ;;  %v2315_v9 = vld [vmem:[#allocation2] sm:$0xff]   ;;  %v2316_v10 = vld [vmem:[#allocation2 + $0x10] sm:$0xff]   ;;  %vm340_vm0 = vcmask 523264   ;;  %v2317_v11 = vld [vmem:[#allocation2 + $0x8] sm:$0xff]   ;;  %p242_p13 = scmp.lt.s32.totalorder %s2473_s15, 2  ;;  %vm470_vm1 = vcmask 261120  }
  0x60   : > { %349 = vmatprep.subr.bf16.mxu1 %v2684_v3  ;;  %798 = vmatprep.subr.bf16.mxu0 %v2684_v3  ;;  %v2318_v12 = vld [vmem:[#allocation2 + $0x18] sm:$0xff]   ;;  %v2333_v51 = vld [vmem:[#allocation2 + $0x20] sm:$0xff]   ;;  %v2334_v52 = vld [vmem:[#allocation2 + $0x30] sm:$0xff]   ;;  %s2220_s11 = smul.u32 1792, %s2668_s27  ;;  %vm719_vm2 = vcmask 785408   ;;  %s2490_s29 = smov [#allocation7]  }
  0x61   : > { %s243_s20 = scalar_select %p242_p13, %s2473_s15, 2  ;;  %v2335_v53 = vld [vmem:[#allocation2 + $0x28] sm:$0xff]   ;;  %v2336_v54 = vld [vmem:[#allocation2 + $0x38] sm:$0xff]  }
  0x62   : > { %s2876_s18 = scalar_lea.vmem [#allocation7], %s2220_s11  ;;  %s2222_s26 = smul.u32 28672, %s2473_s15 }
  0x63   : > { %350 = vmatpush1.bf16.msra.mxu1 %v2688_v4  ;;  %799 = vmatpush1.bf16.msra.mxu0 %v2688_v4  ;;  %s2221_s22 = smul.u32 112, %s243_s20  ;;  %s1800_s7 = sshll.u32 %s2876_s18, 4  ;;  %s3293_s7 = int_to_ptr.vmem [resolvable:$true] %s1800_s7 }
  0x64   : > { %351 = vmatprep.subr.bf16.mxu1 %v2692_v5  ;;  %800 = vmatprep.subr.bf16.mxu0 %v2692_v5  ;;  %s3291_s19 = scalar_lea.hbm %s3354_s3, %s2222_s26  ;;  %s1784_s15 = scalar_lea.sflag [#allocation4], %s2668_s27 }
  0x65   : > { %s2723_s10 = scalar_lea.vmem %s3351_s0, %s2221_s22  ;;  %s2395_s25 = scalar_lea.vmem %s3293_s7, 28672 }
  0x66   : > { %v2726_v37 = vld [vmem:[%s2723_s10] sm:$0xff]   ;;  %v2741_v38 = vld [vmem:[%s2723_s10 + $0x8] sm:$0xff]   ;;  %v2758_v39 = vld [vmem:[%s2723_s10 + $0x10] sm:$0xff]   ;;  %p2396_p6 = scmp.ne.s32.totalorder %s3293_s7, %s2395_s25  ;;  %s2399_s4 = sshll.u32 %s2490_s29, 4  ;;  %s2400_s4 = int_to_ptr.vmem [resolvable:$false] %s2399_s4 }
  0x67   : > { %352 = vmatpush1.bf16.msra.mxu1 %v2696_v6  ;;  %801 = vmatpush1.bf16.msra.mxu0 %v2696_v6  ;;  %v2769_v40 = vld [vmem:[%s2723_s10 + $0x18] sm:$0xff]   ;;  %v2778_v41 = vld [vmem:[%s2723_s10 + $0x20] sm:$0xff]   ;;  %v2787_v42 = vld [vmem:[%s2723_s10 + $0x28] sm:$0xff]   ;;  %s2401_s6 = scalar_lea.vmem %s2400_s4, 57344  ;;  %p2402_p10 = scmp.lt.s32.totalorder %s3293_s7, %s2400_s4 }
  0x68   : > { %353 = vmatprep.subr.bf16.mxu1 %v2700_v7  ;;  %802 = vmatprep.subr.bf16.mxu0 %v2700_v7  ;;  %v2796_v43 = vld [vmem:[%s2723_s10 + $0x30] sm:$0xff]   ;;  %v2805_v44 = vld [vmem:[%s2723_s10 + $0x38] sm:$0xff]   ;;  %v2814_v45 = vld [vmem:[%s2723_s10 + $0x40] sm:$0xff]   ;;  %p2397_p8 = pnand %p2396_p6, %p2608_p11  ;;  %p2403_p0 = scmp.lt.s32.totalorder %s2401_s6, %s2395_s25 }
  0x69   : > { %v2823_v46 = vld [vmem:[%s2723_s10 + $0x48] sm:$0xff]   ;;  %v2832_v47 = vld [vmem:[%s2723_s10 + $0x50] sm:$0xff]   ;;  %v2841_v48 = vld [vmem:[%s2723_s10 + $0x58] sm:$0xff]  }
  0x6a   : > { %v2850_v49 = vld [vmem:[%s2723_s10 + $0x60] sm:$0xff]   ;;  %v2859_v50 = vld [vmem:[%s2723_s10 + $0x68] sm:$0xff]   ;;  %p2398_p12 = pneg %p2397_p8  ;;  %p2404_p5 = por %p2403_p0, %p2402_p10 }
  0x6b   : > { %354 = vmatpush1.bf16.msra.mxu1 %v2702_v8  ;;  %803 = vmatpush1.bf16.msra.mxu0 %v2702_v8 }
  0x6c   : > { %p2405_p9 = pnand %p2404_p5, %p2398_p12 }
  0x6e   : > { %1932 = vmatmul.mubr.msk.bf16.vlgmr.msra.gmra.mrb[0].mxu1 %vm340_vm0, %v2315_v9  ;;  %1964 = vmatmul.mubr.msk.bf16.vlgmr.msra.gmra.mrb[0].mxu0 %vm340_vm0, %v2316_v10 }
  0x6f   : > { %389 = vmatprep.mubr.bf16.mxu1 %v2489_v0  ;;  %838 = vmatprep.mubr.bf16.mxu0 %v2489_v0 }
  0x76   : > { %1933 = vmatmul.mubr.msk.bf16.gmra.mrb[4].mxu1 %vm340_vm0, %v2317_v11  ;;  %1965 = vmatmul.mubr.msk.bf16.gmra.mrb[4].mxu0 %vm340_vm0, %v2318_v12 }
  0x77   : > { %577 = vmatprep.mubr.bf16.mxu1 %v2489_v0  ;;  %913 = vmatprep.mubr.bf16.mxu0 %v2489_v0 }
 0x141   : > { %v381_v13 = vpop.f32.mrb[0].mxu1  ;;  %v830_v14 = vpop.f32.mrb[0].mxu0 }
 0x142   : > { %v383_v15 = vpop.f32.mrb[1].mxu1  ;;  %v832_v16 = vpop.f32.mrb[1].mxu0 }
 0x143   : > { %v385_v17 = vpop.f32.mrb[2].mxu1  ;;  %v834_v18 = vpop.f32.mrb[2].mxu0 }
 0x144   : > { %v2190_v19 = vpack.c.bf16 %v385_v17, %v381_v13  ;;  %v2198_v20 = vpack.c.bf16 %v834_v18, %v830_v14  ;;  %v387_v21 = vpop.f32.mrb[3].mxu1  ;;  %v836_v22 = vpop.f32.mrb[3].mxu0 }
 0x145   : > { %v2188_v23 = vpack.c.bf16 %v387_v21, %v383_v15  ;;  %v2196_v24 = vpack.c.bf16 %v836_v22, %v832_v16 }
 0x147   : > { %2189 = vmatprep.subr.bf16.mxu1 %v2188_v23  ;;  %2197 = vmatprep.subr.bf16.mxu0 %v2196_v24 }
 0x148   : > { %2191 = vmatpush1.bf16.msra.mxu1 %v2190_v19  ;;  %2199 = vmatpush1.bf16.msra.mxu0 %v2198_v20 }
 0x149   : > { %v391_v25 = vpop.f32.mrb[4].mxu1  ;;  %v840_v26 = vpop.f32.mrb[4].mxu0 }
 0x14a   : > { %v393_v27 = vpop.f32.mrb[5].mxu1  ;;  %v842_v28 = vpop.f32.mrb[5].mxu0 }
 0x14b   : > { %v395_v29 = vpop.f32.mrb[6].mxu1  ;;  %v844_v30 = vpop.f32.mrb[6].mxu0 }
 0x14c   : > { %v2194_v31 = vpack.c.bf16 %v395_v29, %v391_v25  ;;  %v2202_v32 = vpack.c.bf16 %v844_v30, %v840_v26  ;;  %v397_v33 = vpop.f32.mrb[7].mxu1  ;;  %v846_v34 = vpop.f32.mrb[7].mxu0 }
 0x14d   : > { %v2192_v35 = vpack.c.bf16 %v397_v33, %v393_v27  ;;  %v2200_v36 = vpack.c.bf16 %v846_v34, %v842_v28 }
 0x14f   : > { %2193 = vmatprep.subr.bf16.mxu1 %v2192_v35  ;;  %2201 = vmatprep.subr.bf16.mxu0 %v2200_v36 }
 0x150   : > { %2195 = vmatpush1.bf16.msra.mxu1 %v2194_v31  ;;  %2203 = vmatpush1.bf16.msra.mxu0 %v2202_v32 }
 0x151   : > { %1132 = vmatprep.subr.bf16.mxu1 %v2678_v1  ;;  %1468 = vmatprep.subr.bf16.mxu0 %v2678_v1 }
 0x153   : > { %1948 = vmatmul.mubr.msk.bf16.vlgmr.msra.gmra.mrb[8].mxu1 %vm470_vm1, %v2726_v37  ;;  %1966 = vmatmul.mubr.msk.bf16.vlgmr.msra.gmra.mrb[8].mxu0 %vm470_vm1, %v2726_v37 }
 0x154   : > { %1133 = vmatpush1.bf16.msra.mxu1 %v2680_v2  ;;  %1469 = vmatpush1.bf16.msra.mxu0 %v2680_v2 }
 0x155   : > { %587 = vmatprep.mubr.bf16.mxu1 %v2489_v0  ;;  %923 = vmatprep.mubr.bf16.mxu0 %v2489_v0 }
 0x156   : > { %1134 = vmatprep.subr.bf16.mxu1 %v2684_v3  ;;  %1470 = vmatprep.subr.bf16.mxu0 %v2684_v3 }
 0x158   : > { %1135 = vmatpush1.bf16.msra.mxu1 %v2688_v4  ;;  %1471 = vmatpush1.bf16.msra.mxu0 %v2688_v4 }
 0x159   : > { %1136 = vmatprep.subr.bf16.mxu1 %v2692_v5  ;;  %1472 = vmatprep.subr.bf16.mxu0 %v2692_v5 }
 0x15b   : > { %1949 = vmatmul.mubr.msk.bf16.gmra.mrb[12].mxu1 %vm470_vm1, %v2741_v38  ;;  %1967 = vmatmul.mubr.msk.bf16.gmra.mrb[12].mxu0 %vm470_vm1, %v2741_v38 }
 0x15c   : > { %597 = vmatprep.mubr.bf16.mxu1 %v2489_v0  ;;  %933 = vmatprep.mubr.bf16.mxu0 %v2489_v0 }
 0x15d   : > { %1137 = vmatpush1.bf16.msra.mxu1 %v2696_v6  ;;  %1473 = vmatpush1.bf16.msra.mxu0 %v2696_v6 }
 0x15e   : > { %1138 = vmatprep.subr.bf16.mxu1 %v2700_v7  ;;  %1474 = vmatprep.subr.bf16.mxu0 %v2700_v7 }
 0x161   : > { %1139 = vmatpush1.bf16.msra.mxu1 %v2702_v8  ;;  %1475 = vmatpush1.bf16.msra.mxu0 %v2702_v8 }
 0x163   : > { %1950 = vmatmul.mubr.msk.bf16.gmra.mrb[16].mxu1 %vm470_vm1, %v2758_v39  ;;  %1968 = vmatmul.mubr.msk.bf16.gmra.mrb[16].mxu0 %vm470_vm1, %v2758_v39 }
 0x164   : > { %607 = vmatprep.mubr.bf16.mxu1 %v2489_v0  ;;  %943 = vmatprep.mubr.bf16.mxu0 %v2489_v0 }
 0x16b   : > { %1951 = vmatmul.mubr.msk.bf16.gmra.mrb[20].mxu1 %vm470_vm1, %v2769_v40  ;;  %1969 = vmatmul.mubr.msk.bf16.gmra.mrb[20].mxu0 %vm470_vm1, %v2769_v40 }
 0x16c   : > { %617 = vmatprep.mubr.bf16.mxu1 %v2489_v0  ;;  %953 = vmatprep.mubr.bf16.mxu0 %v2489_v0 }
 0x173   : > { %1952 = vmatmul.mubr.msk.bf16.gmra.mrb[24].mxu1 %vm470_vm1, %v2778_v41  ;;  %1970 = vmatmul.mubr.msk.bf16.gmra.mrb[24].mxu0 %vm470_vm1, %v2778_v41 }
 0x174   : > { %627 = vmatprep.mubr.bf16.mxu1 %v2489_v0  ;;  %963 = vmatprep.mubr.bf16.mxu0 %v2489_v0 }
 0x17b   : > { %1953 = vmatmul.mubr.msk.bf16.gmra.mrb[28].mxu1 %vm470_vm1, %v2787_v42  ;;  %1971 = vmatmul.mubr.msk.bf16.gmra.mrb[28].mxu0 %vm470_vm1, %v2787_v42 }
 0x17c   : > { %637 = vmatprep.mubr.bf16.mxu1 %v2489_v0  ;;  %973 = vmatprep.mubr.bf16.mxu0 %v2489_v0 }
 0x183   : > { %1954 = vmatmul.mubr.msk.bf16.gmra.mrb[32].mxu1 %vm470_vm1, %v2796_v43  ;;  %1972 = vmatmul.mubr.msk.bf16.gmra.mrb[32].mxu0 %vm470_vm1, %v2796_v43 }
 0x184   : > { %647 = vmatprep.mubr.bf16.mxu1 %v2489_v0  ;;  %983 = vmatprep.mubr.bf16.mxu0 %v2489_v0 }
 0x18b   : > { %1955 = vmatmul.mubr.msk.bf16.gmra.mrb[36].mxu1 %vm470_vm1, %v2805_v44  ;;  %1973 = vmatmul.mubr.msk.bf16.gmra.mrb[36].mxu0 %vm470_vm1, %v2805_v44 }
 0x18c   : > { %657 = vmatprep.mubr.bf16.mxu1 %v2489_v0  ;;  %993 = vmatprep.mubr.bf16.mxu0 %v2489_v0 }
 0x193   : > { %1956 = vmatmul.mubr.msk.bf16.gmra.mrb[40].mxu1 %vm470_vm1, %v2814_v45  ;;  %1974 = vmatmul.mubr.msk.bf16.gmra.mrb[40].mxu0 %vm470_vm1, %v2814_v45 }
 0x194   : > { %667 = vmatprep.mubr.bf16.mxu1 %v2489_v0  ;;  %1003 = vmatprep.mubr.bf16.mxu0 %v2489_v0 }
 0x19b   : > { %1957 = vmatmul.mubr.msk.bf16.gmra.mrb[44].mxu1 %vm470_vm1, %v2823_v46  ;;  %1975 = vmatmul.mubr.msk.bf16.gmra.mrb[44].mxu0 %vm470_vm1, %v2823_v46 }
 0x19c   : > { %677 = vmatprep.mubr.bf16.mxu1 %v2489_v0  ;;  %1013 = vmatprep.mubr.bf16.mxu0 %v2489_v0 }
 0x1a3   : > { %1958 = vmatmul.mubr.msk.bf16.gmra.mrb[48].mxu1 %vm470_vm1, %v2832_v47  ;;  %1976 = vmatmul.mubr.msk.bf16.gmra.mrb[48].mxu0 %vm470_vm1, %v2832_v47 }
 0x1a4   : > { %687 = vmatprep.mubr.bf16.mxu1 %v2489_v0  ;;  %1023 = vmatprep.mubr.bf16.mxu0 %v2489_v0 }
 0x1ab   : > { %1959 = vmatmul.mubr.msk.bf16.gmra.mrb[52].mxu1 %vm470_vm1, %v2841_v48  ;;  %1977 = vmatmul.mubr.msk.bf16.gmra.mrb[52].mxu0 %vm470_vm1, %v2841_v48 }
 0x1ac   : > { %697 = vmatprep.mubr.bf16.mxu1 %v2489_v0  ;;  %1033 = vmatprep.mubr.bf16.mxu0 %v2489_v0 }
 0x1b3   : > { %1960 = vmatmul.mubr.msk.bf16.gmra.mrb[56].mxu1 %vm470_vm1, %v2850_v49  ;;  %1978 = vmatmul.mubr.msk.bf16.gmra.mrb[56].mxu0 %vm470_vm1, %v2850_v49 }
 0x1b4   : > { %707 = vmatprep.mubr.bf16.mxu1 %v2489_v0  ;;  %1043 = vmatprep.mubr.bf16.mxu0 %v2489_v0 }
 0x1bb   : > { %1961 = vmatmul.mubr.msk.bf16.gmra.mrb[60].mxu1 %vm470_vm1, %v2859_v50  ;;  %1979 = vmatmul.mubr.msk.bf16.gmra.mrb[60].mxu0 %vm470_vm1, %v2859_v50 }
 0x1bc   : > { %1164 = vmatprep.mubr.bf16.mxu1 %v2489_v0  ;;  %1500 = vmatprep.mubr.bf16.mxu0 %v2489_v0 }
 0x1c3   : > { %2038 = vmatmul.mubr.msk.bf16.vlgmr.msra.gmra.mrb[64].mxu1 %vm340_vm0, %v2333_v51  ;;  %2112 = vmatmul.mubr.msk.bf16.vlgmr.msra.gmra.mrb[64].mxu0 %vm340_vm0, %v2334_v52 }
 0x1c4   : > { %1174 = vmatprep.mubr.bf16.mxu1 %v2489_v0  ;;  %1510 = vmatprep.mubr.bf16.mxu0 %v2489_v0 }
 0x1cb   : > { %2039 = vmatmul.mubr.msk.bf16.gmra.mrb[68].mxu1 %vm340_vm0, %v2335_v53  ;;  %2113 = vmatmul.mubr.msk.bf16.gmra.mrb[68].mxu0 %vm340_vm0, %v2336_v54 }
 0x1cc   : > { %1249 = vmatprep.mubr.bf16.mxu1 %v2489_v0  ;;  %1585 = vmatprep.mubr.bf16.mxu0 %v2489_v0 }
 0x226   : > { %v579_v55 = vpop.f32.mrb[8].mxu1  ;;  %v915_v56 = vpop.f32.mrb[8].mxu0 }
 0x227   : > { %718 = vst [vmem:[%s2876_s18] sm:$0xff] %v579_v55  ;;  %1980 = vst [vmem:[%s2876_s18 + $0x1c0] sm:$0xff] %v915_v56  ;;  %v581_v57 = vpop.f32.mrb[9].mxu1  ;;  %v917_v58 = vpop.f32.mrb[9].mxu0 }
 0x228   : > { %720 = vst.msk [vmem:[%s2876_s18 + $0x8] sm:$0xff] %vm719_vm2, %v581_v57  ;;  %1981 = vst.msk [vmem:[%s2876_s18 + $0x1c8] sm:$0xff] %vm719_vm2, %v917_v58  ;;  %v583_v59 = vpop.f32.mrb[10].mxu1  ;;  %v919_v60 = vpop.f32.mrb[10].mxu0 }
 0x229   : > { %721 = vst [vmem:[%s2876_s18 + $0x10] sm:$0xff] %v583_v59  ;;  %1982 = vst [vmem:[%s2876_s18 + $0x1d0] sm:$0xff] %v919_v60  ;;  %v585_v61 = vpop.f32.mrb[11].mxu1  ;;  %v921_v62 = vpop.f32.mrb[11].mxu0 }
 0x22a   : > { %722 = vst.msk [vmem:[%s2876_s18 + $0x18] sm:$0xff] %vm719_vm2, %v585_v61  ;;  %1983 = vst.msk [vmem:[%s2876_s18 + $0x1d8] sm:$0xff] %vm719_vm2, %v921_v62 }
 0x22e   : > { %v589_v63 = vpop.f32.mrb[12].mxu1  ;;  %v925_v1 = vpop.f32.mrb[12].mxu0 }
 0x22f   : > { %723 = vst [vmem:[%s2876_s18 + $0x20] sm:$0xff] %v589_v63  ;;  %1984 = vst [vmem:[%s2876_s18 + $0x1e0] sm:$0xff] %v925_v1  ;;  %v591_v2 = vpop.f32.mrb[13].mxu1  ;;  %v927_v3 = vpop.f32.mrb[13].mxu0 }
 0x230   : > { %724 = vst.msk [vmem:[%s2876_s18 + $0x28] sm:$0xff] %vm719_vm2, %v591_v2  ;;  %1985 = vst.msk [vmem:[%s2876_s18 + $0x1e8] sm:$0xff] %vm719_vm2, %v927_v3  ;;  %v593_v4 = vpop.f32.mrb[14].mxu1  ;;  %v929_v5 = vpop.f32.mrb[14].mxu0 }
 0x231   : > { %725 = vst [vmem:[%s2876_s18 + $0x30] sm:$0xff] %v593_v4  ;;  %1986 = vst [vmem:[%s2876_s18 + $0x1f0] sm:$0xff] %v929_v5  ;;  %v595_v6 = vpop.f32.mrb[15].mxu1  ;;  %v931_v7 = vpop.f32.mrb[15].mxu0 }
 0x232   : > { %726 = vst.msk [vmem:[%s2876_s18 + $0x38] sm:$0xff] %vm719_vm2, %v595_v6  ;;  %1987 = vst.msk [vmem:[%s2876_s18 + $0x1f8] sm:$0xff] %vm719_vm2, %v931_v7 }
 0x236   : > { %v599_v8 = vpop.f32.mrb[16].mxu1  ;;  %v935_v9 = vpop.f32.mrb[16].mxu0 }
 0x237   : > { %727 = vst [vmem:[%s2876_s18 + $0x40] sm:$0xff] %v599_v8  ;;  %1988 = vst [vmem:[%s2876_s18 + $0x200] sm:$0xff] %v935_v9  ;;  %v601_v10 = vpop.f32.mrb[17].mxu1  ;;  %v937_v11 = vpop.f32.mrb[17].mxu0 }
 0x238   : > { %728 = vst.msk [vmem:[%s2876_s18 + $0x48] sm:$0xff] %vm719_vm2, %v601_v10  ;;  %1989 = vst.msk [vmem:[%s2876_s18 + $0x208] sm:$0xff] %vm719_vm2, %v937_v11  ;;  %v603_v12 = vpop.f32.mrb[18].mxu1  ;;  %v939_v13 = vpop.f32.mrb[18].mxu0 }
 0x239   : > { %729 = vst [vmem:[%s2876_s18 + $0x50] sm:$0xff] %v603_v12  ;;  %1990 = vst [vmem:[%s2876_s18 + $0x210] sm:$0xff] %v939_v13  ;;  %v605_v14 = vpop.f32.mrb[19].mxu1  ;;  %v941_v15 = vpop.f32.mrb[19].mxu0 }
 0x23a   : > { %730 = vst.msk [vmem:[%s2876_s18 + $0x58] sm:$0xff] %vm719_vm2, %v605_v14  ;;  %1991 = vst.msk [vmem:[%s2876_s18 + $0x218] sm:$0xff] %vm719_vm2, %v941_v15 }
 0x23e   : > { %v609_v16 = vpop.f32.mrb[20].mxu1  ;;  %v945_v17 = vpop.f32.mrb[20].mxu0 }
 0x23f   : > { %731 = vst [vmem:[%s2876_s18 + $0x60] sm:$0xff] %v609_v16  ;;  %1992 = vst [vmem:[%s2876_s18 + $0x220] sm:$0xff] %v945_v17  ;;  %v611_v18 = vpop.f32.mrb[21].mxu1  ;;  %v947_v19 = vpop.f32.mrb[21].mxu0 }
 0x240   : > { %732 = vst.msk [vmem:[%s2876_s18 + $0x68] sm:$0xff] %vm719_vm2, %v611_v18  ;;  %1993 = vst.msk [vmem:[%s2876_s18 + $0x228] sm:$0xff] %vm719_vm2, %v947_v19  ;;  %v613_v20 = vpop.f32.mrb[22].mxu1  ;;  %v949_v21 = vpop.f32.mrb[22].mxu0 }
 0x241   : > { %733 = vst [vmem:[%s2876_s18 + $0x70] sm:$0xff] %v613_v20  ;;  %1994 = vst [vmem:[%s2876_s18 + $0x230] sm:$0xff] %v949_v21  ;;  %v615_v22 = vpop.f32.mrb[23].mxu1  ;;  %v951_v23 = vpop.f32.mrb[23].mxu0 }
 0x242   : > { %734 = vst.msk [vmem:[%s2876_s18 + $0x78] sm:$0xff] %vm719_vm2, %v615_v22  ;;  %1995 = vst.msk [vmem:[%s2876_s18 + $0x238] sm:$0xff] %vm719_vm2, %v951_v23 }
 0x246   : > { %v619_v24 = vpop.f32.mrb[24].mxu1  ;;  %v955_v25 = vpop.f32.mrb[24].mxu0 }
 0x247   : > { %735 = vst [vmem:[%s2876_s18 + $0x80] sm:$0xff] %v619_v24  ;;  %1996 = vst [vmem:[%s2876_s18 + $0x240] sm:$0xff] %v955_v25  ;;  %v621_v26 = vpop.f32.mrb[25].mxu1  ;;  %v957_v27 = vpop.f32.mrb[25].mxu0 }
 0x248   : > { %736 = vst.msk [vmem:[%s2876_s18 + $0x88] sm:$0xff] %vm719_vm2, %v621_v26  ;;  %1997 = vst.msk [vmem:[%s2876_s18 + $0x248] sm:$0xff] %vm719_vm2, %v957_v27  ;;  %v623_v28 = vpop.f32.mrb[26].mxu1  ;;  %v959_v29 = vpop.f32.mrb[26].mxu0 }
 0x249   : > { %737 = vst [vmem:[%s2876_s18 + $0x90] sm:$0xff] %v623_v28  ;;  %1998 = vst [vmem:[%s2876_s18 + $0x250] sm:$0xff] %v959_v29  ;;  %v625_v30 = vpop.f32.mrb[27].mxu1  ;;  %v961_v31 = vpop.f32.mrb[27].mxu0 }
 0x24a   : > { %738 = vst.msk [vmem:[%s2876_s18 + $0x98] sm:$0xff] %vm719_vm2, %v625_v30  ;;  %1999 = vst.msk [vmem:[%s2876_s18 + $0x258] sm:$0xff] %vm719_vm2, %v961_v31 }
 0x24e   : > { %v629_v32 = vpop.f32.mrb[28].mxu1  ;;  %v965_v33 = vpop.f32.mrb[28].mxu0 }
 0x24f   : > { %739 = vst [vmem:[%s2876_s18 + $0xa0] sm:$0xff] %v629_v32  ;;  %2000 = vst [vmem:[%s2876_s18 + $0x260] sm:$0xff] %v965_v33  ;;  %v631_v34 = vpop.f32.mrb[29].mxu1  ;;  %v967_v35 = vpop.f32.mrb[29].mxu0 }
 0x250   : > { %740 = vst.msk [vmem:[%s2876_s18 + $0xa8] sm:$0xff] %vm719_vm2, %v631_v34  ;;  %2001 = vst.msk [vmem:[%s2876_s18 + $0x268] sm:$0xff] %vm719_vm2, %v967_v35  ;;  %v633_v36 = vpop.f32.mrb[30].mxu1  ;;  %v969_v51 = vpop.f32.mrb[30].mxu0 }
 0x251   : > { %741 = vst [vmem:[%s2876_s18 + $0xb0] sm:$0xff] %v633_v36  ;;  %2002 = vst [vmem:[%s2876_s18 + $0x270] sm:$0xff] %v969_v51  ;;  %v635_v52 = vpop.f32.mrb[31].mxu1  ;;  %v971_v53 = vpop.f32.mrb[31].mxu0 }
 0x252   : > { %742 = vst.msk [vmem:[%s2876_s18 + $0xb8] sm:$0xff] %vm719_vm2, %v635_v52  ;;  %2003 = vst.msk [vmem:[%s2876_s18 + $0x278] sm:$0xff] %vm719_vm2, %v971_v53 }
 0x256   : > { %v639_v54 = vpop.f32.mrb[32].mxu1  ;;  %v975_v55 = vpop.f32.mrb[32].mxu0 }
 0x257   : > { %743 = vst [vmem:[%s2876_s18 + $0xc0] sm:$0xff] %v639_v54  ;;  %2004 = vst [vmem:[%s2876_s18 + $0x280] sm:$0xff] %v975_v55  ;;  %v641_v56 = vpop.f32.mrb[33].mxu1  ;;  %v977_v57 = vpop.f32.mrb[33].mxu0 }
 0x258   : > { %744 = vst.msk [vmem:[%s2876_s18 + $0xc8] sm:$0xff] %vm719_vm2, %v641_v56  ;;  %2005 = vst.msk [vmem:[%s2876_s18 + $0x288] sm:$0xff] %vm719_vm2, %v977_v57  ;;  %v643_v58 = vpop.f32.mrb[34].mxu1  ;;  %v979_v59 = vpop.f32.mrb[34].mxu0 }
 0x259   : > { %745 = vst [vmem:[%s2876_s18 + $0xd0] sm:$0xff] %v643_v58  ;;  %2006 = vst [vmem:[%s2876_s18 + $0x290] sm:$0xff] %v979_v59  ;;  %v645_v60 = vpop.f32.mrb[35].mxu1  ;;  %v981_v61 = vpop.f32.mrb[35].mxu0 }
 0x25a   : > { %746 = vst.msk [vmem:[%s2876_s18 + $0xd8] sm:$0xff] %vm719_vm2, %v645_v60  ;;  %2007 = vst.msk [vmem:[%s2876_s18 + $0x298] sm:$0xff] %vm719_vm2, %v981_v61 }
 0x25e   : > { %v649_v62 = vpop.f32.mrb[36].mxu1  ;;  %v985_v63 = vpop.f32.mrb[36].mxu0 }
 0x25f   : > { %747 = vst [vmem:[%s2876_s18 + $0xe0] sm:$0xff] %v649_v62  ;;  %2008 = vst [vmem:[%s2876_s18 + $0x2a0] sm:$0xff] %v985_v63  ;;  %v651_v1 = vpop.f32.mrb[37].mxu1  ;;  %v987_v2 = vpop.f32.mrb[37].mxu0 }
 0x260   : > { %748 = vst.msk [vmem:[%s2876_s18 + $0xe8] sm:$0xff] %vm719_vm2, %v651_v1  ;;  %2009 = vst.msk [vmem:[%s2876_s18 + $0x2a8] sm:$0xff] %vm719_vm2, %v987_v2  ;;  %v653_v3 = vpop.f32.mrb[38].mxu1  ;;  %v989_v4 = vpop.f32.mrb[38].mxu0 }
 0x261   : > { %749 = vst [vmem:[%s2876_s18 + $0xf0] sm:$0xff] %v653_v3  ;;  %2010 = vst [vmem:[%s2876_s18 + $0x2b0] sm:$0xff] %v989_v4  ;;  %v655_v5 = vpop.f32.mrb[39].mxu1  ;;  %v991_v6 = vpop.f32.mrb[39].mxu0 }
 0x262   : > { %750 = vst.msk [vmem:[%s2876_s18 + $0xf8] sm:$0xff] %vm719_vm2, %v655_v5  ;;  %2011 = vst.msk [vmem:[%s2876_s18 + $0x2b8] sm:$0xff] %vm719_vm2, %v991_v6 }
 0x266   : > { %v659_v7 = vpop.f32.mrb[40].mxu1  ;;  %v995_v8 = vpop.f32.mrb[40].mxu0 }
 0x267   : > { %751 = vst [vmem:[%s2876_s18 + $0x100] sm:$0xff] %v659_v7  ;;  %2012 = vst [vmem:[%s2876_s18 + $0x2c0] sm:$0xff] %v995_v8  ;;  %v661_v9 = vpop.f32.mrb[41].mxu1  ;;  %v997_v10 = vpop.f32.mrb[41].mxu0 }
 0x268   : > { %752 = vst.msk [vmem:[%s2876_s18 + $0x108] sm:$0xff] %vm719_vm2, %v661_v9  ;;  %2013 = vst.msk [vmem:[%s2876_s18 + $0x2c8] sm:$0xff] %vm719_vm2, %v997_v10  ;;  %v663_v11 = vpop.f32.mrb[42].mxu1  ;;  %v999_v12 = vpop.f32.mrb[42].mxu0 }
 0x269   : > { %753 = vst [vmem:[%s2876_s18 + $0x110] sm:$0xff] %v663_v11  ;;  %2014 = vst [vmem:[%s2876_s18 + $0x2d0] sm:$0xff] %v999_v12  ;;  %v665_v13 = vpop.f32.mrb[43].mxu1  ;;  %v1001_v14 = vpop.f32.mrb[43].mxu0 }
 0x26a   : > { %754 = vst.msk [vmem:[%s2876_s18 + $0x118] sm:$0xff] %vm719_vm2, %v665_v13  ;;  %2015 = vst.msk [vmem:[%s2876_s18 + $0x2d8] sm:$0xff] %vm719_vm2, %v1001_v14 }
 0x26e   : > { %v669_v15 = vpop.f32.mrb[44].mxu1  ;;  %v1005_v16 = vpop.f32.mrb[44].mxu0 }
 0x26f   : > { %755 = vst [vmem:[%s2876_s18 + $0x120] sm:$0xff] %v669_v15  ;;  %2016 = vst [vmem:[%s2876_s18 + $0x2e0] sm:$0xff] %v1005_v16  ;;  %v671_v17 = vpop.f32.mrb[45].mxu1  ;;  %v1007_v18 = vpop.f32.mrb[45].mxu0 }
 0x270   : > { %756 = vst.msk [vmem:[%s2876_s18 + $0x128] sm:$0xff] %vm719_vm2, %v671_v17  ;;  %2017 = vst.msk [vmem:[%s2876_s18 + $0x2e8] sm:$0xff] %vm719_vm2, %v1007_v18  ;;  %v673_v19 = vpop.f32.mrb[46].mxu1  ;;  %v1009_v20 = vpop.f32.mrb[46].mxu0 }
 0x271   : > { %757 = vst [vmem:[%s2876_s18 + $0x130] sm:$0xff] %v673_v19  ;;  %2018 = vst [vmem:[%s2876_s18 + $0x2f0] sm:$0xff] %v1009_v20  ;;  %v675_v21 = vpop.f32.mrb[47].mxu1  ;;  %v1011_v22 = vpop.f32.mrb[47].mxu0 }
 0x272   : > { %758 = vst.msk [vmem:[%s2876_s18 + $0x138] sm:$0xff] %vm719_vm2, %v675_v21  ;;  %2019 = vst.msk [vmem:[%s2876_s18 + $0x2f8] sm:$0xff] %vm719_vm2, %v1011_v22 }
 0x276   : > { %v679_v23 = vpop.f32.mrb[48].mxu1  ;;  %v1015_v24 = vpop.f32.mrb[48].mxu0 }
 0x277   : > { %759 = vst [vmem:[%s2876_s18 + $0x140] sm:$0xff] %v679_v23  ;;  %2020 = vst [vmem:[%s2876_s18 + $0x300] sm:$0xff] %v1015_v24  ;;  %v681_v25 = vpop.f32.mrb[49].mxu1  ;;  %v1017_v26 = vpop.f32.mrb[49].mxu0 }
 0x278   : > { %760 = vst.msk [vmem:[%s2876_s18 + $0x148] sm:$0xff] %vm719_vm2, %v681_v25  ;;  %2021 = vst.msk [vmem:[%s2876_s18 + $0x308] sm:$0xff] %vm719_vm2, %v1017_v26  ;;  %v683_v27 = vpop.f32.mrb[50].mxu1  ;;  %v1019_v28 = vpop.f32.mrb[50].mxu0 }
 0x279   : > { %761 = vst [vmem:[%s2876_s18 + $0x150] sm:$0xff] %v683_v27  ;;  %2022 = vst [vmem:[%s2876_s18 + $0x310] sm:$0xff] %v1019_v28  ;;  %v685_v29 = vpop.f32.mrb[51].mxu1  ;;  %v1021_v30 = vpop.f32.mrb[51].mxu0 }
 0x27a   : > { %762 = vst.msk [vmem:[%s2876_s18 + $0x158] sm:$0xff] %vm719_vm2, %v685_v29  ;;  %2023 = vst.msk [vmem:[%s2876_s18 + $0x318] sm:$0xff] %vm719_vm2, %v1021_v30 }
 0x27e   : > { %v689_v31 = vpop.f32.mrb[52].mxu1  ;;  %v1025_v32 = vpop.f32.mrb[52].mxu0 }
 0x27f   : > { %763 = vst [vmem:[%s2876_s18 + $0x160] sm:$0xff] %v689_v31  ;;  %2024 = vst [vmem:[%s2876_s18 + $0x320] sm:$0xff] %v1025_v32  ;;  %v691_v33 = vpop.f32.mrb[53].mxu1  ;;  %v1027_v34 = vpop.f32.mrb[53].mxu0 }
 0x280   : > { %764 = vst.msk [vmem:[%s2876_s18 + $0x168] sm:$0xff] %vm719_vm2, %v691_v33  ;;  %2025 = vst.msk [vmem:[%s2876_s18 + $0x328] sm:$0xff] %vm719_vm2, %v1027_v34  ;;  %v693_v35 = vpop.f32.mrb[54].mxu1  ;;  %v1029_v36 = vpop.f32.mrb[54].mxu0 }
 0x281   : > { %765 = vst [vmem:[%s2876_s18 + $0x170] sm:$0xff] %v693_v35  ;;  %2026 = vst [vmem:[%s2876_s18 + $0x330] sm:$0xff] %v1029_v36  ;;  %v695_v51 = vpop.f32.mrb[55].mxu1  ;;  %v1031_v52 = vpop.f32.mrb[55].mxu0 }
 0x282   : > { %766 = vst.msk [vmem:[%s2876_s18 + $0x178] sm:$0xff] %vm719_vm2, %v695_v51  ;;  %2027 = vst.msk [vmem:[%s2876_s18 + $0x338] sm:$0xff] %vm719_vm2, %v1031_v52 }
 0x286   : > { %v699_v53 = vpop.f32.mrb[56].mxu1  ;;  %v1035_v54 = vpop.f32.mrb[56].mxu0 }
 0x287   : > { %767 = vst [vmem:[%s2876_s18 + $0x180] sm:$0xff] %v699_v53  ;;  %2028 = vst [vmem:[%s2876_s18 + $0x340] sm:$0xff] %v1035_v54  ;;  %v701_v55 = vpop.f32.mrb[57].mxu1  ;;  %v1037_v56 = vpop.f32.mrb[57].mxu0 }
 0x288   : > { %768 = vst.msk [vmem:[%s2876_s18 + $0x188] sm:$0xff] %vm719_vm2, %v701_v55  ;;  %2029 = vst.msk [vmem:[%s2876_s18 + $0x348] sm:$0xff] %vm719_vm2, %v1037_v56  ;;  %v703_v57 = vpop.f32.mrb[58].mxu1  ;;  %v1039_v58 = vpop.f32.mrb[58].mxu0 }
 0x289   : > { %769 = vst [vmem:[%s2876_s18 + $0x190] sm:$0xff] %v703_v57  ;;  %2030 = vst [vmem:[%s2876_s18 + $0x350] sm:$0xff] %v1039_v58  ;;  %v705_v59 = vpop.f32.mrb[59].mxu1  ;;  %v1041_v60 = vpop.f32.mrb[59].mxu0 }
 0x28a   : > { %770 = vst.msk [vmem:[%s2876_s18 + $0x198] sm:$0xff] %vm719_vm2, %v705_v59  ;;  %2031 = vst.msk [vmem:[%s2876_s18 + $0x358] sm:$0xff] %vm719_vm2, %v1041_v60 }
 0x28e   : > { %v709_v61 = vpop.f32.mrb[60].mxu1  ;;  %v1045_v62 = vpop.f32.mrb[60].mxu0 }
 0x28f   : > { %771 = vst [vmem:[%s2876_s18 + $0x1a0] sm:$0xff] %v709_v61  ;;  %2032 = vst [vmem:[%s2876_s18 + $0x360] sm:$0xff] %v1045_v62  ;;  %v711_v63 = vpop.f32.mrb[61].mxu1  ;;  %v1047_v1 = vpop.f32.mrb[61].mxu0 }
 0x290   : > { %772 = vst.msk [vmem:[%s2876_s18 + $0x1a8] sm:$0xff] %vm719_vm2, %v711_v63  ;;  %2033 = vst.msk [vmem:[%s2876_s18 + $0x368] sm:$0xff] %vm719_vm2, %v1047_v1  ;;  %v713_v2 = vpop.f32.mrb[62].mxu1  ;;  %v1049_v3 = vpop.f32.mrb[62].mxu0 }
 0x291   : > { %773 = vst [vmem:[%s2876_s18 + $0x1b0] sm:$0xff] %v713_v2  ;;  %2034 = vst [vmem:[%s2876_s18 + $0x370] sm:$0xff] %v1049_v3  ;;  %v715_v4 = vpop.f32.mrb[63].mxu1  ;;  %v1051_v5 = vpop.f32.mrb[63].mxu0 }
 0x292   : > { %774 = vst.msk [vmem:[%s2876_s18 + $0x1b8] sm:$0xff] %vm719_vm2, %v715_v4  ;;  %2035 = vst.msk [vmem:[%s2876_s18 + $0x378] sm:$0xff] %vm719_vm2, %v1051_v5 }
 0x296   : > { %v1166_v6 = vpop.f32.mrb[64].mxu1  ;;  %v1502_v7 = vpop.f32.mrb[64].mxu0 }
 0x297   : > { %v1168_v8 = vpop.f32.mrb[65].mxu1  ;;  %v1504_v9 = vpop.f32.mrb[65].mxu0 }
 0x298   : > { %v1170_v10 = vpop.f32.mrb[66].mxu1  ;;  %v1506_v11 = vpop.f32.mrb[66].mxu0 }
 0x299   : > { %v2206_v12 = vpack.c.bf16 %v1170_v10, %v1166_v6  ;;  %v2214_v13 = vpack.c.bf16 %v1506_v11, %v1502_v7  ;;  %v1172_v14 = vpop.f32.mrb[67].mxu1  ;;  %v1508_v15 = vpop.f32.mrb[67].mxu0 }
 0x29a   : > { %v2204_v16 = vpack.c.bf16 %v1172_v14, %v1168_v8  ;;  %v2212_v17 = vpack.c.bf16 %v1508_v15, %v1504_v9 }
 0x29c   : > { %2205 = vmatprep.subr.bf16.mxu1 %v2204_v16  ;;  %2213 = vmatprep.subr.bf16.mxu0 %v2212_v17 }
 0x29d   : > { %2207 = vmatpush1.bf16.msra.mxu1 %v2206_v12  ;;  %2215 = vmatpush1.bf16.msra.mxu0 %v2214_v13 }
 0x29e   : > { %v1176_v18 = vpop.f32.mrb[68].mxu1  ;;  %v1512_v19 = vpop.f32.mrb[68].mxu0 }
 0x29f   : > { %v1178_v20 = vpop.f32.mrb[69].mxu1  ;;  %v1514_v21 = vpop.f32.mrb[69].mxu0 }
 0x2a0   : > { %v1180_v22 = vpop.f32.mrb[70].mxu1  ;;  %v1516_v23 = vpop.f32.mrb[70].mxu0 }
 0x2a1   : > { %v2210_v24 = vpack.c.bf16 %v1180_v22, %v1176_v18  ;;  %v2218_v25 = vpack.c.bf16 %v1516_v23, %v1512_v19  ;;  %v1182_v26 = vpop.f32.mrb[71].mxu1  ;;  %v1518_v27 = vpop.f32.mrb[71].mxu0 }
 0x2a2   : > { %v2208_v28 = vpack.c.bf16 %v1182_v26, %v1178_v20  ;;  %v2216_v29 = vpack.c.bf16 %v1518_v27, %v1514_v21 }
 0x2a4   : > { %2209 = vmatprep.subr.bf16.mxu1 %v2208_v28  ;;  %2217 = vmatprep.subr.bf16.mxu0 %v2216_v29 }
 0x2a5   : > { %2211 = vmatpush1.bf16.msra.mxu1 %v2210_v24  ;;  %2219 = vmatpush1.bf16.msra.mxu0 %v2218_v25 }
 0x2a8   : > { %2040 = vmatmul.mubr.msk.bf16.vlgmr.msra.gmra.mrb[72].mxu1 %vm470_vm1, %v2726_v37  ;;  %2114 = vmatmul.mubr.msk.bf16.vlgmr.msra.gmra.mrb[72].mxu0 %vm470_vm1, %v2726_v37 }
 0x2a9   : > { %1259 = vmatprep.mubr.bf16.mxu1 %v2489_v0  ;;  %1595 = vmatprep.mubr.bf16.mxu0 %v2489_v0 }
 0x2b0   : > { %2041 = vmatmul.mubr.msk.bf16.gmra.mrb[76].mxu1 %vm470_vm1, %v2741_v38  ;;  %2115 = vmatmul.mubr.msk.bf16.gmra.mrb[76].mxu0 %vm470_vm1, %v2741_v38 }
 0x2b1   : > { %1269 = vmatprep.mubr.bf16.mxu1 %v2489_v0  ;;  %1605 = vmatprep.mubr.bf16.mxu0 %v2489_v0 }
 0x2b8   : > { %2042 = vmatmul.mubr.msk.bf16.gmra.mrb[80].mxu1 %vm470_vm1, %v2758_v39  ;;  %2116 = vmatmul.mubr.msk.bf16.gmra.mrb[80].mxu0 %vm470_vm1, %v2758_v39 }
 0x2b9   : > { %1279 = vmatprep.mubr.bf16.mxu1 %v2489_v0  ;;  %1615 = vmatprep.mubr.bf16.mxu0 %v2489_v0 }
 0x2c0   : > { %2043 = vmatmul.mubr.msk.bf16.gmra.mrb[84].mxu1 %vm470_vm1, %v2769_v40  ;;  %2117 = vmatmul.mubr.msk.bf16.gmra.mrb[84].mxu0 %vm470_vm1, %v2769_v40 }
 0x2c1   : > { %1289 = vmatprep.mubr.bf16.mxu1 %v2489_v0  ;;  %1625 = vmatprep.mubr.bf16.mxu0 %v2489_v0 }
 0x2c8   : > { %2044 = vmatmul.mubr.msk.bf16.gmra.mrb[88].mxu1 %vm470_vm1, %v2778_v41  ;;  %2118 = vmatmul.mubr.msk.bf16.gmra.mrb[88].mxu0 %vm470_vm1, %v2778_v41 }
 0x2c9   : > { %1299 = vmatprep.mubr.bf16.mxu1 %v2489_v0  ;;  %1635 = vmatprep.mubr.bf16.mxu0 %v2489_v0 }
 0x2d0   : > { %2045 = vmatmul.mubr.msk.bf16.gmra.mrb[92].mxu1 %vm470_vm1, %v2787_v42  ;;  %2119 = vmatmul.mubr.msk.bf16.gmra.mrb[92].mxu0 %vm470_vm1, %v2787_v42 }
 0x2d1   : > { %1309 = vmatprep.mubr.bf16.mxu1 %v2489_v0  ;;  %1645 = vmatprep.mubr.bf16.mxu0 %v2489_v0 }
 0x2d8   : > { %2046 = vmatmul.mubr.msk.bf16.gmra.mrb[96].mxu1 %vm470_vm1, %v2796_v43  ;;  %2120 = vmatmul.mubr.msk.bf16.gmra.mrb[96].mxu0 %vm470_vm1, %v2796_v43 }
 0x2d9   : > { %1319 = vmatprep.mubr.bf16.mxu1 %v2489_v0  ;;  %1655 = vmatprep.mubr.bf16.mxu0 %v2489_v0 }
 0x2e0   : > { %2047 = vmatmul.mubr.msk.bf16.gmra.mrb[100].mxu1 %vm470_vm1, %v2805_v44  ;;  %2121 = vmatmul.mubr.msk.bf16.gmra.mrb[100].mxu0 %vm470_vm1, %v2805_v44 }
 0x2e1   : > { %1329 = vmatprep.mubr.bf16.mxu1 %v2489_v0  ;;  %1665 = vmatprep.mubr.bf16.mxu0 %v2489_v0 }
 0x2e8   : > { %2048 = vmatmul.mubr.msk.bf16.gmra.mrb[104].mxu1 %vm470_vm1, %v2814_v45  ;;  %2122 = vmatmul.mubr.msk.bf16.gmra.mrb[104].mxu0 %vm470_vm1, %v2814_v45 }
 0x2e9   : > { %1339 = vmatprep.mubr.bf16.mxu1 %v2489_v0  ;;  %1675 = vmatprep.mubr.bf16.mxu0 %v2489_v0 }
 0x2f0   : > { %2049 = vmatmul.mubr.msk.bf16.gmra.mrb[108].mxu1 %vm470_vm1, %v2823_v46  ;;  %2123 = vmatmul.mubr.msk.bf16.gmra.mrb[108].mxu0 %vm470_vm1, %v2823_v46 }
 0x2f1   : > { %1349 = vmatprep.mubr.bf16.mxu1 %v2489_v0  ;;  %1685 = vmatprep.mubr.bf16.mxu0 %v2489_v0 }
 0x2f8   : > { %2050 = vmatmul.mubr.msk.bf16.gmra.mrb[112].mxu1 %vm470_vm1, %v2832_v47  ;;  %2124 = vmatmul.mubr.msk.bf16.gmra.mrb[112].mxu0 %vm470_vm1, %v2832_v47 }
 0x2f9   : > { %1359 = vmatprep.mubr.bf16.mxu1 %v2489_v0  ;;  %1695 = vmatprep.mubr.bf16.mxu0 %v2489_v0 }
 0x300   : > { %2051 = vmatmul.mubr.msk.bf16.gmra.mrb[116].mxu1 %vm470_vm1, %v2841_v48  ;;  %2125 = vmatmul.mubr.msk.bf16.gmra.mrb[116].mxu0 %vm470_vm1, %v2841_v48 }
 0x301   : > { %1369 = vmatprep.mubr.bf16.mxu1 %v2489_v0  ;;  %1705 = vmatprep.mubr.bf16.mxu0 %v2489_v0 }
 0x308   : > { %2052 = vmatmul.mubr.msk.bf16.gmra.mrb[120].mxu1 %vm470_vm1, %v2850_v49  ;;  %2126 = vmatmul.mubr.msk.bf16.gmra.mrb[120].mxu0 %vm470_vm1, %v2850_v49 }
 0x309   : > { %1379 = vmatprep.mubr.bf16.mxu1 %v2489_v0  ;;  %1715 = vmatprep.mubr.bf16.mxu0 %v2489_v0 }
 0x310   : > { %2053 = vmatmul.mubr.msk.bf16.gmra.mrb[124].mxu1 %vm470_vm1, %v2859_v50  ;;  %2127 = vmatmul.mubr.msk.bf16.gmra.mrb[124].mxu0 %vm470_vm1, %v2859_v50 }
 0x37b   : > { %v1251_v37 = vpop.f32.mrb[72].mxu1  ;;  %v1587_v38 = vpop.f32.mrb[72].mxu0 }
 0x37c   : > { %2054 = vst [vmem:[%s2876_s18 + $0x380] sm:$0xff] %v1251_v37  ;;  %2128 = vst [vmem:[%s2876_s18 + $0x540] sm:$0xff] %v1587_v38  ;;  %v1253_v39 = vpop.f32.mrb[73].mxu1  ;;  %v1589_v40 = vpop.f32.mrb[73].mxu0 }
 0x37d   : > { %2055 = vst.msk [vmem:[%s2876_s18 + $0x388] sm:$0xff] %vm719_vm2, %v1253_v39  ;;  %2129 = vst.msk [vmem:[%s2876_s18 + $0x548] sm:$0xff] %vm719_vm2, %v1589_v40  ;;  %v1255_v0 = vpop.f32.mrb[74].mxu1  ;;  %v1591_v41 = vpop.f32.mrb[74].mxu0 }
 0x37e   : > { %2056 = vst [vmem:[%s2876_s18 + $0x390] sm:$0xff] %v1255_v0  ;;  %2130 = vst [vmem:[%s2876_s18 + $0x550] sm:$0xff] %v1591_v41  ;;  %v1257_v42 = vpop.f32.mrb[75].mxu1  ;;  %v1593_v43 = vpop.f32.mrb[75].mxu0 }
 0x37f   : > { %2057 = vst.msk [vmem:[%s2876_s18 + $0x398] sm:$0xff] %vm719_vm2, %v1257_v42  ;;  %2131 = vst.msk [vmem:[%s2876_s18 + $0x558] sm:$0xff] %vm719_vm2, %v1593_v43 }
 0x383   : > { %v1261_v44 = vpop.f32.mrb[76].mxu1  ;;  %v1597_v45 = vpop.f32.mrb[76].mxu0 }
 0x384   : > { %2058 = vst [vmem:[%s2876_s18 + $0x3a0] sm:$0xff] %v1261_v44  ;;  %2132 = vst [vmem:[%s2876_s18 + $0x560] sm:$0xff] %v1597_v45  ;;  %v1263_v46 = vpop.f32.mrb[77].mxu1  ;;  %v1599_v47 = vpop.f32.mrb[77].mxu0 }
 0x385   : > { %2059 = vst.msk [vmem:[%s2876_s18 + $0x3a8] sm:$0xff] %vm719_vm2, %v1263_v46  ;;  %2133 = vst.msk [vmem:[%s2876_s18 + $0x568] sm:$0xff] %vm719_vm2, %v1599_v47  ;;  %v1265_v48 = vpop.f32.mrb[78].mxu1  ;;  %v1601_v49 = vpop.f32.mrb[78].mxu0 }
 0x386   : > { %2060 = vst [vmem:[%s2876_s18 + $0x3b0] sm:$0xff] %v1265_v48  ;;  %2134 = vst [vmem:[%s2876_s18 + $0x570] sm:$0xff] %v1601_v49  ;;  %v1267_v50 = vpop.f32.mrb[79].mxu1  ;;  %v1603_v30 = vpop.f32.mrb[79].mxu0 }
 0x387   : > { %2061 = vst.msk [vmem:[%s2876_s18 + $0x3b8] sm:$0xff] %vm719_vm2, %v1267_v50  ;;  %2135 = vst.msk [vmem:[%s2876_s18 + $0x578] sm:$0xff] %vm719_vm2, %v1603_v30 }
 0x38b   : > { %v1271_v31 = vpop.f32.mrb[80].mxu1  ;;  %v1607_v32 = vpop.f32.mrb[80].mxu0 }
 0x38c   : > { %2062 = vst [vmem:[%s2876_s18 + $0x3c0] sm:$0xff] %v1271_v31  ;;  %2136 = vst [vmem:[%s2876_s18 + $0x580] sm:$0xff] %v1607_v32  ;;  %v1273_v33 = vpop.f32.mrb[81].mxu1  ;;  %v1609_v34 = vpop.f32.mrb[81].mxu0 }
 0x38d   : > { %2063 = vst.msk [vmem:[%s2876_s18 + $0x3c8] sm:$0xff] %vm719_vm2, %v1273_v33  ;;  %2137 = vst.msk [vmem:[%s2876_s18 + $0x588] sm:$0xff] %vm719_vm2, %v1609_v34  ;;  %v1275_v35 = vpop.f32.mrb[82].mxu1  ;;  %v1611_v36 = vpop.f32.mrb[82].mxu0 }
 0x38e   : > { %2064 = vst [vmem:[%s2876_s18 + $0x3d0] sm:$0xff] %v1275_v35  ;;  %2138 = vst [vmem:[%s2876_s18 + $0x590] sm:$0xff] %v1611_v36  ;;  %v1277_v51 = vpop.f32.mrb[83].mxu1  ;;  %v1613_v52 = vpop.f32.mrb[83].mxu0 }
 0x38f   : > { %2065 = vst.msk [vmem:[%s2876_s18 + $0x3d8] sm:$0xff] %vm719_vm2, %v1277_v51  ;;  %2139 = vst.msk [vmem:[%s2876_s18 + $0x598] sm:$0xff] %vm719_vm2, %v1613_v52 }
 0x393   : > { %v1281_v53 = vpop.f32.mrb[84].mxu1  ;;  %v1617_v54 = vpop.f32.mrb[84].mxu0 }
 0x394   : > { %2066 = vst [vmem:[%s2876_s18 + $0x3e0] sm:$0xff] %v1281_v53  ;;  %2140 = vst [vmem:[%s2876_s18 + $0x5a0] sm:$0xff] %v1617_v54  ;;  %v1283_v55 = vpop.f32.mrb[85].mxu1  ;;  %v1619_v56 = vpop.f32.mrb[85].mxu0 }
 0x395   : > { %2067 = vst.msk [vmem:[%s2876_s18 + $0x3e8] sm:$0xff] %vm719_vm2, %v1283_v55  ;;  %2141 = vst.msk [vmem:[%s2876_s18 + $0x5a8] sm:$0xff] %vm719_vm2, %v1619_v56  ;;  %v1285_v57 = vpop.f32.mrb[86].mxu1  ;;  %v1621_v58 = vpop.f32.mrb[86].mxu0 }
 0x396   : > { %2068 = vst [vmem:[%s2876_s18 + $0x3f0] sm:$0xff] %v1285_v57  ;;  %2142 = vst [vmem:[%s2876_s18 + $0x5b0] sm:$0xff] %v1621_v58  ;;  %v1287_v59 = vpop.f32.mrb[87].mxu1  ;;  %v1623_v60 = vpop.f32.mrb[87].mxu0 }
 0x397   : > { %2069 = vst.msk [vmem:[%s2876_s18 + $0x3f8] sm:$0xff] %vm719_vm2, %v1287_v59  ;;  %2143 = vst.msk [vmem:[%s2876_s18 + $0x5b8] sm:$0xff] %vm719_vm2, %v1623_v60 }
 0x39b   : > { %v1291_v61 = vpop.f32.mrb[88].mxu1  ;;  %v1627_v62 = vpop.f32.mrb[88].mxu0 }
 0x39c   : > { %2070 = vst [vmem:[%s2876_s18 + $0x400] sm:$0xff] %v1291_v61  ;;  %2144 = vst [vmem:[%s2876_s18 + $0x5c0] sm:$0xff] %v1627_v62  ;;  %v1293_v63 = vpop.f32.mrb[89].mxu1  ;;  %v1629_v1 = vpop.f32.mrb[89].mxu0 }
 0x39d   : > { %2071 = vst.msk [vmem:[%s2876_s18 + $0x408] sm:$0xff] %vm719_vm2, %v1293_v63  ;;  %2145 = vst.msk [vmem:[%s2876_s18 + $0x5c8] sm:$0xff] %vm719_vm2, %v1629_v1  ;;  %v1295_v2 = vpop.f32.mrb[90].mxu1  ;;  %v1631_v3 = vpop.f32.mrb[90].mxu0 }
 0x39e   : > { %2072 = vst [vmem:[%s2876_s18 + $0x410] sm:$0xff] %v1295_v2  ;;  %2146 = vst [vmem:[%s2876_s18 + $0x5d0] sm:$0xff] %v1631_v3  ;;  %v1297_v4 = vpop.f32.mrb[91].mxu1  ;;  %v1633_v5 = vpop.f32.mrb[91].mxu0 }
 0x39f   : > { %2073 = vst.msk [vmem:[%s2876_s18 + $0x418] sm:$0xff] %vm719_vm2, %v1297_v4  ;;  %2147 = vst.msk [vmem:[%s2876_s18 + $0x5d8] sm:$0xff] %vm719_vm2, %v1633_v5 }
 0x3a3   : > { %v1301_v6 = vpop.f32.mrb[92].mxu1  ;;  %v1637_v7 = vpop.f32.mrb[92].mxu0 }
 0x3a4   : > { %2074 = vst [vmem:[%s2876_s18 + $0x420] sm:$0xff] %v1301_v6  ;;  %2148 = vst [vmem:[%s2876_s18 + $0x5e0] sm:$0xff] %v1637_v7  ;;  %v1303_v8 = vpop.f32.mrb[93].mxu1  ;;  %v1639_v9 = vpop.f32.mrb[93].mxu0 }
 0x3a5   : > { %2075 = vst.msk [vmem:[%s2876_s18 + $0x428] sm:$0xff] %vm719_vm2, %v1303_v8  ;;  %2149 = vst.msk [vmem:[%s2876_s18 + $0x5e8] sm:$0xff] %vm719_vm2, %v1639_v9  ;;  %v1305_v10 = vpop.f32.mrb[94].mxu1  ;;  %v1641_v11 = vpop.f32.mrb[94].mxu0 }
 0x3a6   : > { %2076 = vst [vmem:[%s2876_s18 + $0x430] sm:$0xff] %v1305_v10  ;;  %2150 = vst [vmem:[%s2876_s18 + $0x5f0] sm:$0xff] %v1641_v11  ;;  %v1307_v12 = vpop.f32.mrb[95].mxu1  ;;  %v1643_v13 = vpop.f32.mrb[95].mxu0 }
 0x3a7   : > { %2077 = vst.msk [vmem:[%s2876_s18 + $0x438] sm:$0xff] %vm719_vm2, %v1307_v12  ;;  %2151 = vst.msk [vmem:[%s2876_s18 + $0x5f8] sm:$0xff] %vm719_vm2, %v1643_v13 }
 0x3ab   : > { %v1311_v14 = vpop.f32.mrb[96].mxu1  ;;  %v1647_v15 = vpop.f32.mrb[96].mxu0 }
 0x3ac   : > { %2078 = vst [vmem:[%s2876_s18 + $0x440] sm:$0xff] %v1311_v14  ;;  %2152 = vst [vmem:[%s2876_s18 + $0x600] sm:$0xff] %v1647_v15  ;;  %v1313_v16 = vpop.f32.mrb[97].mxu1  ;;  %v1649_v17 = vpop.f32.mrb[97].mxu0 }
 0x3ad   : > { %2079 = vst.msk [vmem:[%s2876_s18 + $0x448] sm:$0xff] %vm719_vm2, %v1313_v16  ;;  %2153 = vst.msk [vmem:[%s2876_s18 + $0x608] sm:$0xff] %vm719_vm2, %v1649_v17  ;;  %v1315_v18 = vpop.f32.mrb[98].mxu1  ;;  %v1651_v19 = vpop.f32.mrb[98].mxu0 }
 0x3ae   : > { %2080 = vst [vmem:[%s2876_s18 + $0x450] sm:$0xff] %v1315_v18  ;;  %2154 = vst [vmem:[%s2876_s18 + $0x610] sm:$0xff] %v1651_v19  ;;  %v1317_v20 = vpop.f32.mrb[99].mxu1  ;;  %v1653_v21 = vpop.f32.mrb[99].mxu0 }
 0x3af   : > { %2081 = vst.msk [vmem:[%s2876_s18 + $0x458] sm:$0xff] %vm719_vm2, %v1317_v20  ;;  %2155 = vst.msk [vmem:[%s2876_s18 + $0x618] sm:$0xff] %vm719_vm2, %v1653_v21 }
 0x3b3   : > { %v1321_v22 = vpop.f32.mrb[100].mxu1  ;;  %v1657_v23 = vpop.f32.mrb[100].mxu0 }
 0x3b4   : > { %2082 = vst [vmem:[%s2876_s18 + $0x460] sm:$0xff] %v1321_v22  ;;  %2156 = vst [vmem:[%s2876_s18 + $0x620] sm:$0xff] %v1657_v23  ;;  %v1323_v24 = vpop.f32.mrb[101].mxu1  ;;  %v1659_v25 = vpop.f32.mrb[101].mxu0 }
 0x3b5   : > { %2083 = vst.msk [vmem:[%s2876_s18 + $0x468] sm:$0xff] %vm719_vm2, %v1323_v24  ;;  %2157 = vst.msk [vmem:[%s2876_s18 + $0x628] sm:$0xff] %vm719_vm2, %v1659_v25  ;;  %v1325_v26 = vpop.f32.mrb[102].mxu1  ;;  %v1661_v27 = vpop.f32.mrb[102].mxu0 }
 0x3b6   : > { %2084 = vst [vmem:[%s2876_s18 + $0x470] sm:$0xff] %v1325_v26  ;;  %2158 = vst [vmem:[%s2876_s18 + $0x630] sm:$0xff] %v1661_v27  ;;  %v1327_v28 = vpop.f32.mrb[103].mxu1  ;;  %v1663_v29 = vpop.f32.mrb[103].mxu0 }
 0x3b7   : > { %2085 = vst.msk [vmem:[%s2876_s18 + $0x478] sm:$0xff] %vm719_vm2, %v1327_v28  ;;  %2159 = vst.msk [vmem:[%s2876_s18 + $0x638] sm:$0xff] %vm719_vm2, %v1663_v29 }
 0x3bb   : > { %v1331_v37 = vpop.f32.mrb[104].mxu1  ;;  %v1667_v38 = vpop.f32.mrb[104].mxu0 }
 0x3bc   : > { %2086 = vst [vmem:[%s2876_s18 + $0x480] sm:$0xff] %v1331_v37  ;;  %2160 = vst [vmem:[%s2876_s18 + $0x640] sm:$0xff] %v1667_v38  ;;  %v1333_v39 = vpop.f32.mrb[105].mxu1  ;;  %v1669_v40 = vpop.f32.mrb[105].mxu0 }
 0x3bd   : > { %2087 = vst.msk [vmem:[%s2876_s18 + $0x488] sm:$0xff] %vm719_vm2, %v1333_v39  ;;  %2161 = vst.msk [vmem:[%s2876_s18 + $0x648] sm:$0xff] %vm719_vm2, %v1669_v40  ;;  %v1335_v0 = vpop.f32.mrb[106].mxu1  ;;  %v1671_v41 = vpop.f32.mrb[106].mxu0 }
 0x3be   : > { %2088 = vst [vmem:[%s2876_s18 + $0x490] sm:$0xff] %v1335_v0  ;;  %2162 = vst [vmem:[%s2876_s18 + $0x650] sm:$0xff] %v1671_v41  ;;  %v1337_v42 = vpop.f32.mrb[107].mxu1  ;;  %v1673_v43 = vpop.f32.mrb[107].mxu0 }
 0x3bf   : > { %2089 = vst.msk [vmem:[%s2876_s18 + $0x498] sm:$0xff] %vm719_vm2, %v1337_v42  ;;  %2163 = vst.msk [vmem:[%s2876_s18 + $0x658] sm:$0xff] %vm719_vm2, %v1673_v43 }
 0x3c3   : > { %v1341_v44 = vpop.f32.mrb[108].mxu1  ;;  %v1677_v45 = vpop.f32.mrb[108].mxu0 }
 0x3c4   : > { %2090 = vst [vmem:[%s2876_s18 + $0x4a0] sm:$0xff] %v1341_v44  ;;  %2164 = vst [vmem:[%s2876_s18 + $0x660] sm:$0xff] %v1677_v45  ;;  %v1343_v46 = vpop.f32.mrb[109].mxu1  ;;  %v1679_v47 = vpop.f32.mrb[109].mxu0 }
 0x3c5   : > { %2091 = vst.msk [vmem:[%s2876_s18 + $0x4a8] sm:$0xff] %vm719_vm2, %v1343_v46  ;;  %2165 = vst.msk [vmem:[%s2876_s18 + $0x668] sm:$0xff] %vm719_vm2, %v1679_v47  ;;  %v1345_v48 = vpop.f32.mrb[110].mxu1  ;;  %v1681_v49 = vpop.f32.mrb[110].mxu0 }
 0x3c6   : > { %2092 = vst [vmem:[%s2876_s18 + $0x4b0] sm:$0xff] %v1345_v48  ;;  %2166 = vst [vmem:[%s2876_s18 + $0x670] sm:$0xff] %v1681_v49  ;;  %v1347_v50 = vpop.f32.mrb[111].mxu1  ;;  %v1683_v30 = vpop.f32.mrb[111].mxu0 }
 0x3c7   : > { %2093 = vst.msk [vmem:[%s2876_s18 + $0x4b8] sm:$0xff] %vm719_vm2, %v1347_v50  ;;  %2167 = vst.msk [vmem:[%s2876_s18 + $0x678] sm:$0xff] %vm719_vm2, %v1683_v30 }
 0x3cb   : > { %v1351_v31 = vpop.f32.mrb[112].mxu1  ;;  %v1687_v32 = vpop.f32.mrb[112].mxu0 }
 0x3cc   : > { %2094 = vst [vmem:[%s2876_s18 + $0x4c0] sm:$0xff] %v1351_v31  ;;  %2168 = vst [vmem:[%s2876_s18 + $0x680] sm:$0xff] %v1687_v32  ;;  %v1353_v33 = vpop.f32.mrb[113].mxu1  ;;  %v1689_v34 = vpop.f32.mrb[113].mxu0 }
 0x3cd   : > { %2095 = vst.msk [vmem:[%s2876_s18 + $0x4c8] sm:$0xff] %vm719_vm2, %v1353_v33  ;;  %2169 = vst.msk [vmem:[%s2876_s18 + $0x688] sm:$0xff] %vm719_vm2, %v1689_v34  ;;  %v1355_v35 = vpop.f32.mrb[114].mxu1  ;;  %v1691_v36 = vpop.f32.mrb[114].mxu0 }
 0x3ce   : > { %2096 = vst [vmem:[%s2876_s18 + $0x4d0] sm:$0xff] %v1355_v35  ;;  %2170 = vst [vmem:[%s2876_s18 + $0x690] sm:$0xff] %v1691_v36  ;;  %v1357_v51 = vpop.f32.mrb[115].mxu1  ;;  %v1693_v52 = vpop.f32.mrb[115].mxu0 }
 0x3cf   : > { %2097 = vst.msk [vmem:[%s2876_s18 + $0x4d8] sm:$0xff] %vm719_vm2, %v1357_v51  ;;  %2171 = vst.msk [vmem:[%s2876_s18 + $0x698] sm:$0xff] %vm719_vm2, %v1693_v52 }
 0x3d3   : > { %v1361_v53 = vpop.f32.mrb[116].mxu1  ;;  %v1697_v54 = vpop.f32.mrb[116].mxu0 }
 0x3d4   : > { %2098 = vst [vmem:[%s2876_s18 + $0x4e0] sm:$0xff] %v1361_v53  ;;  %2172 = vst [vmem:[%s2876_s18 + $0x6a0] sm:$0xff] %v1697_v54  ;;  %v1363_v55 = vpop.f32.mrb[117].mxu1  ;;  %v1699_v56 = vpop.f32.mrb[117].mxu0 }
 0x3d5   : > { %2099 = vst.msk [vmem:[%s2876_s18 + $0x4e8] sm:$0xff] %vm719_vm2, %v1363_v55  ;;  %2173 = vst.msk [vmem:[%s2876_s18 + $0x6a8] sm:$0xff] %vm719_vm2, %v1699_v56  ;;  %v1365_v57 = vpop.f32.mrb[118].mxu1  ;;  %v1701_v58 = vpop.f32.mrb[118].mxu0 }
 0x3d6   : > { %2100 = vst [vmem:[%s2876_s18 + $0x4f0] sm:$0xff] %v1365_v57  ;;  %2174 = vst [vmem:[%s2876_s18 + $0x6b0] sm:$0xff] %v1701_v58  ;;  %v1367_v59 = vpop.f32.mrb[119].mxu1  ;;  %v1703_v60 = vpop.f32.mrb[119].mxu0 }
 0x3d7   : > { %2101 = vst.msk [vmem:[%s2876_s18 + $0x4f8] sm:$0xff] %vm719_vm2, %v1367_v59  ;;  %2175 = vst.msk [vmem:[%s2876_s18 + $0x6b8] sm:$0xff] %vm719_vm2, %v1703_v60 }
 0x3db   : > { %v1371_v61 = vpop.f32.mrb[120].mxu1  ;;  %v1707_v62 = vpop.f32.mrb[120].mxu0 }
 0x3dc   : > { %2102 = vst [vmem:[%s2876_s18 + $0x500] sm:$0xff] %v1371_v61  ;;  %2176 = vst [vmem:[%s2876_s18 + $0x6c0] sm:$0xff] %v1707_v62  ;;  %v1373_v63 = vpop.f32.mrb[121].mxu1  ;;  %v1709_v1 = vpop.f32.mrb[121].mxu0 }
 0x3dd   : > { %2103 = vst.msk [vmem:[%s2876_s18 + $0x508] sm:$0xff] %vm719_vm2, %v1373_v63  ;;  %2177 = vst.msk [vmem:[%s2876_s18 + $0x6c8] sm:$0xff] %vm719_vm2, %v1709_v1  ;;  %v1375_v2 = vpop.f32.mrb[122].mxu1  ;;  %v1711_v3 = vpop.f32.mrb[122].mxu0 }
 0x3de   : > { %2104 = vst [vmem:[%s2876_s18 + $0x510] sm:$0xff] %v1375_v2  ;;  %2178 = vst [vmem:[%s2876_s18 + $0x6d0] sm:$0xff] %v1711_v3  ;;  %v1377_v4 = vpop.f32.mrb[123].mxu1  ;;  %v1713_v5 = vpop.f32.mrb[123].mxu0 }
 0x3df   : > { %2105 = vst.msk [vmem:[%s2876_s18 + $0x518] sm:$0xff] %vm719_vm2, %v1377_v4  ;;  %2179 = vst.msk [vmem:[%s2876_s18 + $0x6d8] sm:$0xff] %vm719_vm2, %v1713_v5 }
 0x3e3   : > { %v1381_v6 = vpop.f32.mrb[124].mxu1  ;;  %v1717_v7 = vpop.f32.mrb[124].mxu0 }
 0x3e4   : > { %2106 = vst [vmem:[%s2876_s18 + $0x520] sm:$0xff] %v1381_v6  ;;  %2180 = vst [vmem:[%s2876_s18 + $0x6e0] sm:$0xff] %v1717_v7  ;;  %v1383_v8 = vpop.f32.mrb[125].mxu1  ;;  %v1719_v9 = vpop.f32.mrb[125].mxu0 }
 0x3e5   : > { %2107 = vst.msk [vmem:[%s2876_s18 + $0x528] sm:$0xff] %vm719_vm2, %v1383_v8  ;;  %2181 = vst.msk [vmem:[%s2876_s18 + $0x6e8] sm:$0xff] %vm719_vm2, %v1719_v9  ;;  %v1385_v10 = vpop.f32.mrb[126].mxu1  ;;  %v1721_v11 = vpop.f32.mrb[126].mxu0 }
 0x3e6   : > { %2108 = vst [vmem:[%s2876_s18 + $0x530] sm:$0xff] %v1385_v10  ;;  %2182 = vst [vmem:[%s2876_s18 + $0x6f0] sm:$0xff] %v1721_v11  ;;  %v1387_v12 = vpop.f32.mrb[127].mxu1  ;;  %v1723_v13 = vpop.f32.mrb[127].mxu0 }
 0x3e7   : > { %2109 = vst.msk [vmem:[%s2876_s18 + $0x538] sm:$0xff] %vm719_vm2, %v1387_v12  ;;  %2183 = vst.msk [vmem:[%s2876_s18 + $0x6f8] sm:$0xff] %vm719_vm2, %v1723_v13 }
 0x3e8   : > { %2408 = shalt.err (!%p2405_p9)
}
 0x3e9   : > { %s2409_s20 = scalar_lea.hbm %s3291_s19, 28672  ;;  %s2413_s9 = scalar_lea.hbm %s3354_s3, 86016 }
 0x3ea   : > { %p2410_p1 = scmp.ne.s32.totalorder %s3291_s19, %s2409_s20  ;;  %p2414_p7 = scmp.lt.u32.totalorder %s3291_s19, %s3354_s3 }
 0x3eb   : > { %p2415_p4 = scmp.lt.u32.totalorder %s2413_s9, %s2409_s20  ;;  %p2417_p6 = scmp.lt.u32.totalorder %s2409_s20, %s3291_s19 }
 0x3ec   : > { %p2411_p2 = pnand %p2410_p1, %p2608_p11 }
 0x3ed   : > { %p2416_p13 = por %p2415_p4, %p2414_p7 }
 0x3ee   : > { %p2412_p3 = pneg %p2411_p2 }
 0x3ef   : > { %p2418_p8 = por %p2417_p6, %p2416_p13 }
 0x3f1   : > { %p2419_p12 = pnand %p2418_p8, %p2412_p3 }
 0x3f3   : > { %2422 = shalt.err (!%p2419_p12)
}
 0x3f4   : > { %s2491_s18 = smov 256   ;;  %s2492_s26 = smov 16  }
 0x3f5   : > { %2229 = dma.vmem_to_hbm [thread:$0]  (%p2608_p11), %s3293_s7, 28672, %s3291_s19, %s1784_s15, %s2491_s18, %s2491_s18, %s2492_s26  }
 0x3f6 PF: > { %p2246_p10 = scmp.ge.s32.totalorder %s2481_s17, 2  ;;  %s1815_s8 = sand.u32 1, %s2461_s12  }
 0x3f7   : > { %p3372_p0 = scmp.ne.s32.totalorder %s3362_s23, 0  ;;  %s1816_s21 = scalar_lea.sflag [#allocation4], %s1815_s8 }
 0x3f9   : > { %p2240_p5 = pnand %p2246_p10, %p3372_p0 }
 0x3fb   : > { %2456 = dma.done.wait (!%p2240_p5), %s1816_s21, 28672  }
 0x3fc   : > { %2458 = vsyncadd (!%p2240_p5), %s1816_s21, 4294938624  ;;  %s20_s17 = sadd.s32 1, %s2481_s17   ;;  %s3373_s12 = smov %s2465_s13 }
 0x3fd   : > { %p17_p9 = scmp.ge.s32.totalorder %s20_s17, 5   ;;  %s3374_s13 = smov %s2469_s14 }
 0x3fe   : > { %s3375_s14 = smov %s2617_s5  ;;  %s3376_s15 = smov %s2477_s16 }
 0x3ff   : > { %s3377_s16 = smov %s3379_s28  ;;  %19 = sbr.rel (!%p17_p9) target bundleno = 7 (0x7), region = 92 }
 0x406   :  { %1821 = vsyncpa [#allocation3], 1 }
 0x407   :  { %1823 = vsyncpa [#allocation3 + $0x1], 1 }
 0x408   :  { %1824 = vsyncpa [#allocation6], 1 }
 0x409   :  { %1826 = vsyncpa [#allocation6 + $0x1], 1 }
 0x40a   :  { %1827 = vsyncpa [#allocation4], 1 }
 0x40b   :  { %1829 = vsyncpa [#allocation4 + $0x1], 1 }

</bundles_post_ra>
